<compile_context>
chip_gen: v6e
topology: v6e:2x2x1
jax: 0.10.0
libtpu: 0.0.40
codegen_flags: <defaults>
</compile_context>

<pallas_src>
import functools

import jax
import jax.numpy as jnp
from jax.experimental import pallas as pl
from jax.experimental.pallas import tpu as pltpu

EPS = 1e-5


def residual_block_kernel(x_ref, w_ref, gb_ref, mask_ref, seg_ref, segt_ref, o_ref,
                          *, W, HW):
    # x_ref   : (Cp, N)        activations; channels on sublanes, N = (#images)*H*W lanes
    # w_ref   : (2, Cp, 9*Cp)  packed conv1/conv2 weights, (C_out, [ky, kx, C_in])
    # gb_ref  : (Cp, 4)        [gamma1, beta1, gamma2, beta2]
    # mask_ref: (9*Cp, N)      precomputed border-validity masks for the 9 taps (f32 0/1)
    # seg_ref : (N, Bb)        lane -> image one-hot (segment-reduction matrix)
    # segt_ref: (Bb, N)        image -> lane broadcast matrix (seg transposed)
    # o_ref   : (Cp, N)
    N = x_ref.shape[1]
    inv_hw = 1.0 / HW

    x = x_ref[...]                      # (Cp, N) f32
    mask = mask_ref[...]                # (9*Cp, N)
    seg = seg_ref[...]                  # (N, Bb)
    seg_t = segt_ref[...]               # (Bb, N)
    gb = gb_ref[...]                    # (Cp, 4)

    def conv3x3(h, w):
        # im2col via 8 lane rotations (XLU) + one mask multiply, then a single MXU matmul:
        #   (Cp, 9*Cp) @ (9*Cp, N) -> (Cp, N).  Border masks zero every tap that would read
        # out of its own image (also covers wrap across image boundaries on the lane axis).
        taps = []
        for dy in (-1, 0, 1):
            for dx in (-1, 0, 1):
                off = dy * W + dx
                taps.append(h if off == 0 else pltpu.roll(h, shift=(-off) % N, axis=1))
        slab = jnp.concatenate(taps, axis=0) * mask              # (9*Cp, N)
        return jnp.dot(w, slab, preferred_element_type=jnp.float32)

    def inst_norm(h, g, b):
        # Per-image/per-channel stats over H*W (biased variance, eps=1e-5), single pass:
        # independent segment reductions for sum and sum-of-squares on the idle MXU,
        # var = E[h^2] - mean^2, then MXU broadcast-back of the folded scale/shift.
        mean = jnp.dot(h, seg, preferred_element_type=jnp.float32) * inv_hw      # (Cp, Bb)
        msq = jnp.dot(h * h, seg, preferred_element_type=jnp.float32) * inv_hw   # (Cp, Bb)
        a = jax.lax.rsqrt(msq - mean * mean + EPS) * g            # per-image scale * gamma
        c = b - mean * a                                          # per-image shift
        a_l = jnp.dot(a, seg_t, preferred_element_type=jnp.float32)              # (Cp, N)
        c_l = jnp.dot(c, seg_t, preferred_element_type=jnp.float32)
        return h * a_l + c_l

    # conv1 -> IN1 -> ReLU
    h = jnp.maximum(inst_norm(conv3x3(x, w_ref[0]), gb[:, 0:1], gb[:, 1:2]), 0.0)
    # conv2 -> IN2, residual add
    y = inst_norm(conv3x3(h, w_ref[1]), gb[:, 2:3], gb[:, 3:4])
    o_ref[...] = (x + y).astype(o_ref.dtype)


def _num_lane_blocks(batch):
    # One grid step on single-TC chips (v5e/v6e); a 2-wide "parallel" axis on 2-TC chips (v7x).
    try:
        kind = jax.devices()[0].device_kind.lower()
    except Exception:
        return 1
    return 2 if ("v7" in kind and batch % 2 == 0) else 1


def residual_block(x_nchw, w1_oihw, g1, b1, w2_oihw, g2, b2, num_blocks=None):
    """x_nchw: (B, C, H, W) float32.  Conv weights in PyTorch OIHW layout."""
    B, C, H, W = x_nchw.shape
    HW = H * W
    assert HW % 128 == 0, "spatial extent must keep the lane axis 128-aligned"
    Cp = max(8, -(-C // 8) * 8)                 # pad channels to a full sublane tile
    if num_blocks is None:
        num_blocks = _num_lane_blocks(B)
    assert B % num_blocks == 0
    Bb = B // num_blocks                        # whole images per grid block
    Nblk = Bb * HW                              # lanes per grid block
    N = B * HW
    f32 = jnp.float32

    # ---- activations: (B,C,H,W) -> channel-padded, lane-dense (Cp, B*HW) ----
    xp = jnp.pad(x_nchw.astype(f32), ((0, 0), (0, Cp - C), (0, 0), (0, 0)))
    x = jnp.transpose(xp.reshape(B, Cp, HW), (1, 0, 2)).reshape(Cp, N)

    # ---- weights: OIHW -> (Cout_p, [ky,kx,Cin_p]); both convs fused into one tile ----
    def pack_w(w):
        wp = jnp.pad(w.astype(f32), ((0, Cp - C), (0, Cp - C), (0, 0), (0, 0)))
        return jnp.transpose(wp, (0, 2, 3, 1)).reshape(Cp, 9 * Cp)
    w = jnp.stack([pack_w(w1_oihw), pack_w(w2_oihw)], axis=0)          # (2, Cp, 9Cp)

    # ---- gamma/beta fused into one tiny resident tile ----
    pad1 = lambda v: jnp.pad(v.astype(f32), (0, Cp - C))
    gb = jnp.stack([pad1(g1), pad1(b1), pad1(g2), pad1(b2)], axis=1)   # (Cp, 4)

    # ---- static tap border masks (hoisted out of the kernel body) ----
    q = jnp.arange(Nblk, dtype=jnp.int32) % HW
    row, col = q // W, q % W
    masks = []
    for dy in (-1, 0, 1):
        for dx in (-1, 0, 1):
            valid = ((row + dy >= 0) & (row + dy < H) &
                     (col + dx >= 0) & (col + dx < W)).astype(f32)
            masks.append(jnp.broadcast_to(valid[None, :], (Cp, Nblk)))
    mask = jnp.concatenate(masks, axis=0)                              # (9Cp, Nblk)

    # ---- per-image segment matrices for InstanceNorm reductions / broadcast-back ----
    seg = (jnp.arange(Nblk)[:, None] // HW ==
           jnp.arange(Bb)[None, :]).astype(f32)                        # (Nblk, Bb)
    seg_t = seg.T                                                      # (Bb, Nblk)

    kernel = functools.partial(residual_block_kernel, W=W, HW=HW)

    out = pl.pallas_call(
        kernel,
        out_shape=jax.ShapeDtypeStruct((Cp, N), f32),
        grid_spec=pltpu.PrefetchScalarGridSpec(
            num_scalar_prefetch=0,
            grid=(num_blocks,),
            in_specs=[
                pl.BlockSpec((Cp, Nblk), lambda g: (0, g)),
                pl.BlockSpec((2, Cp, 9 * Cp), lambda g: (0, 0, 0)),    # resident
                pl.BlockSpec((Cp, 4), lambda g: (0, 0)),               # resident
                pl.BlockSpec((9 * Cp, Nblk), lambda g: (0, 0)),        # resident
                pl.BlockSpec((Nblk, Bb), lambda g: (0, 0)),            # resident
                pl.BlockSpec((Bb, Nblk), lambda g: (0, 0)),            # resident
            ],
            out_specs=pl.BlockSpec((Cp, Nblk), lambda g: (0, g)),
        ),
        compiler_params=pltpu.CompilerParams(
            dimension_semantics=("parallel",)),                        # shard across TCs on v7x
    )(x, w, gb, mask, seg, seg_t)

    out = jnp.transpose(out.reshape(Cp, B, HW), (1, 0, 2))[:, :C]
    return out.reshape(B, C, H, W).astype(x_nchw.dtype)


def reference(x, w1, g1, b1, w2, g2, b2):
    """Pure-JAX reference of the PyTorch forward (NCHW, training-mode InstanceNorm)."""
    def conv(h, w):
        return jax.lax.conv_general_dilated(
            h, w, (1, 1), "SAME", dimension_numbers=("NCHW", "OIHW", "NCHW"))

    def inorm(h, g, b):
        mean = h.mean(axis=(2, 3), keepdims=True)
        var = ((h - mean) ** 2).mean(axis=(2, 3), keepdims=True)
        hn = (h - mean) / jnp.sqrt(var + EPS)
        return hn * g[None, :, None, None] + b[None, :, None, None]

    h = jax.nn.relu(inorm(conv(x, w1), g1, b1))
    y = inorm(conv(h, w2), g2, b2)
    return x + y


if __name__ == "__main__":
    B, C, H, W = 2, 4, 16, 16          # dim_in == dim_out == C (required by residual add)

    key = jax.random.PRNGKey(0)
    k1, k2, k3, k4, k5, k6, kx = jax.random.split(key, 7)

    fan = (3 * 3 * C) ** 0.5
    w1 = jax.random.normal(k1, (C, C, 3, 3), jnp.float32) / fan   # Conv2d(dim_in, dim_out), OIHW
    w2 = jax.random.normal(k2, (C, C, 3, 3), jnp.float32) / fan   # Conv2d(dim_out, dim_out), OIHW
    g1 = 1.0 + 0.1 * jax.random.normal(k3, (C,), jnp.float32)     # InstanceNorm gamma/beta
    b1 = 0.1 * jax.random.normal(k4, (C,), jnp.float32)
    g2 = 1.0 + 0.1 * jax.random.normal(k5, (C,), jnp.float32)
    b2 = 0.1 * jax.random.normal(k6, (C,), jnp.float32)

    x = jax.random.normal(kx, (B, C, H, W), jnp.float32)

    y = jax.block_until_ready(residual_block(x, w1, g1, b1, w2, g2, b2))
    y_ref = reference(x, w1, g1, b1, w2, g2, b2)

    assert y.shape == (B, C, H, W) and y.dtype == jnp.float32
    err = float(jnp.abs(y - y_ref).max())
    assert jnp.allclose(y, y_ref, atol=1e-3, rtol=1e-3), err
    print("KERNEL_OK")
</pallas_src>

<mosaic_0001>
module attributes {stable_mosaic.version = 11 : i64} {
  func.func @residual_block_kernel(%arg0: i32, %arg1: memref<8x512xf32, #tpu.memory_space<vmem>>, %arg2: memref<2x8x72xf32, #tpu.memory_space<vmem>>, %arg3: memref<8x4xf32, #tpu.memory_space<vmem>>, %arg4: memref<72x512xf32, #tpu.memory_space<vmem>>, %arg5: memref<512x2xf32, #tpu.memory_space<vmem>>, %arg6: memref<2x512xf32, #tpu.memory_space<vmem>>, %arg7: memref<8x512xf32, #tpu.memory_space<vmem>>) attributes {dimension_semantics = [#tpu.dimension_semantics<parallel>], iteration_bounds = array<i64: 1>, scalar_prefetch = 0 : i64, scratch_operands = 0 : i64, tpu.core_type = #tpu.core_type<tc>, window_params = [{transform_indices = @transform_0, window_bounds = array<i64: 8, 512>}, {pipeline_mode = #tpu.pipeline_mode<synchronous>, transform_indices = @transform_1, window_bounds = array<i64: 2, 8, 72>}, {pipeline_mode = #tpu.pipeline_mode<synchronous>, transform_indices = @transform_2, window_bounds = array<i64: 8, 4>}, {pipeline_mode = #tpu.pipeline_mode<synchronous>, transform_indices = @transform_3, window_bounds = array<i64: 72, 512>}, {pipeline_mode = #tpu.pipeline_mode<synchronous>, transform_indices = @transform_4, window_bounds = array<i64: 512, 2>}, {pipeline_mode = #tpu.pipeline_mode<synchronous>, transform_indices = @transform_5, window_bounds = array<i64: 2, 512>}, {transform_indices = @transform_6, window_bounds = array<i64: 8, 512>}]} {
    %c0 = arith.constant 0 : index
    %c0_0 = arith.constant 0 : index
    %0 = vector.load %arg1[%c0, %c0_0] : memref<8x512xf32, #tpu.memory_space<vmem>>, vector<8x512xf32>
    %c0_1 = arith.constant 0 : index
    %c0_2 = arith.constant 0 : index
    %1 = vector.load %arg4[%c0_1, %c0_2] : memref<72x512xf32, #tpu.memory_space<vmem>>, vector<72x512xf32>
    %c0_3 = arith.constant 0 : index
    %c0_4 = arith.constant 0 : index
    %2 = vector.load %arg5[%c0_3, %c0_4] : memref<512x2xf32, #tpu.memory_space<vmem>>, vector<512x2xf32>
    %c0_5 = arith.constant 0 : index
    %c0_6 = arith.constant 0 : index
    %3 = vector.load %arg6[%c0_5, %c0_6] : memref<2x512xf32, #tpu.memory_space<vmem>>, vector<2x512xf32>
    %c0_7 = arith.constant 0 : index
    %c0_8 = arith.constant 0 : index
    %4 = vector.load %arg3[%c0_7, %c0_8] : memref<8x4xf32, #tpu.memory_space<vmem>>, vector<8x4xf32>
    %c0_9 = arith.constant 0 : index
    %c0_10 = arith.constant 0 : index
    %c0_11 = arith.constant 0 : index
    %5 = vector.load %arg2[%c0_9, %c0_10, %c0_11] : memref<2x8x72xf32, #tpu.memory_space<vmem>>, vector<1x8x72xf32>
    %6 = vector.shape_cast %5 : vector<1x8x72xf32> to vector<8x72xf32>
    %c17_i32 = arith.constant 17 : i32
    %7 = tpu.dynamic_rotate %0 by %c17_i32 dim 1 : vector<8x512xf32>, i32 -> vector<8x512xf32>
    %c16_i32 = arith.constant 16 : i32
    %8 = tpu.dynamic_rotate %0 by %c16_i32 dim 1 : vector<8x512xf32>, i32 -> vector<8x512xf32>
    %c15_i32 = arith.constant 15 : i32
    %9 = tpu.dynamic_rotate %0 by %c15_i32 dim 1 : vector<8x512xf32>, i32 -> vector<8x512xf32>
    %c1_i32 = arith.constant 1 : i32
    %10 = tpu.dynamic_rotate %0 by %c1_i32 dim 1 : vector<8x512xf32>, i32 -> vector<8x512xf32>
    %c511_i32 = arith.constant 511 : i32
    %11 = tpu.dynamic_rotate %0 by %c511_i32 dim 1 : vector<8x512xf32>, i32 -> vector<8x512xf32>
    %c497_i32 = arith.constant 497 : i32
    %12 = tpu.dynamic_rotate %0 by %c497_i32 dim 1 : vector<8x512xf32>, i32 -> vector<8x512xf32>
    %c496_i32 = arith.constant 496 : i32
    %13 = tpu.dynamic_rotate %0 by %c496_i32 dim 1 : vector<8x512xf32>, i32 -> vector<8x512xf32>
    %c495_i32 = arith.constant 495 : i32
    %14 = tpu.dynamic_rotate %0 by %c495_i32 dim 1 : vector<8x512xf32>, i32 -> vector<8x512xf32>
    %15 = tpu.concatenate %7, %8, %9, %10, %0, %11, %12, %13, %14 in 0 : vector<8x512xf32>, vector<8x512xf32>, vector<8x512xf32>, vector<8x512xf32>, vector<8x512xf32>, vector<8x512xf32>, vector<8x512xf32>, vector<8x512xf32>, vector<8x512xf32> -> vector<72x512xf32>
    %16 = arith.mulf %15, %1 : vector<72x512xf32>
    %cst = arith.constant dense<0.000000e+00> : vector<8x512xf32>
    %17 = tpu.matmul %6, %16, %cst {dimension_numbers = #tpu.dot_dimension_numbers<[1], [0], [0], [1], [0, 0, 1, 1], [], []>} : vector<8x72xf32>, vector<72x512xf32>, vector<8x512xf32> -> vector<8x512xf32>
    %18 = vector.extract_strided_slice %4 {offsets = [0, 0], sizes = [8, 1], strides = [1, 1]} : vector<8x4xf32> to vector<8x1xf32>
    %19 = vector.extract_strided_slice %4 {offsets = [0, 1], sizes = [8, 1], strides = [1, 1]} : vector<8x4xf32> to vector<8x1xf32>
    %cst_12 = arith.constant dense<0.000000e+00> : vector<8x2xf32>
    %20 = tpu.matmul %17, %2, %cst_12 {dimension_numbers = #tpu.dot_dimension_numbers<[1], [0], [0], [1], [0, 0, 1, 1], [], []>} : vector<8x512xf32>, vector<512x2xf32>, vector<8x2xf32> -> vector<8x2xf32>
    %cst_13 = arith.constant 3.906250e-03 : f32
    %21 = vector.broadcast %cst_13 : f32 to vector<8x2xf32>
    %22 = arith.mulf %20, %21 : vector<8x2xf32>
    %23 = arith.mulf %17, %17 : vector<8x512xf32>
    %cst_14 = arith.constant dense<0.000000e+00> : vector<8x2xf32>
    %24 = tpu.matmul %23, %2, %cst_14 {dimension_numbers = #tpu.dot_dimension_numbers<[1], [0], [0], [1], [0, 0, 1, 1], [], []>} : vector<8x512xf32>, vector<512x2xf32>, vector<8x2xf32> -> vector<8x2xf32>
    %cst_15 = arith.constant 3.906250e-03 : f32
    %25 = vector.broadcast %cst_15 : f32 to vector<8x2xf32>
    %26 = arith.mulf %24, %25 : vector<8x2xf32>
    %27 = arith.mulf %22, %22 : vector<8x2xf32>
    %28 = arith.subf %26, %27 : vector<8x2xf32>
    %cst_16 = arith.constant 9.99999974E-6 : f32
    %29 = vector.broadcast %cst_16 : f32 to vector<8x2xf32>
    %30 = arith.addf %28, %29 : vector<8x2xf32>
    %31 = math.rsqrt %30 : vector<8x2xf32>
    %32 = vector.broadcast %18 : vector<8x1xf32> to vector<8x2xf32>
    %33 = arith.mulf %31, %32 : vector<8x2xf32>
    %34 = arith.mulf %22, %33 : vector<8x2xf32>
    %35 = vector.broadcast %19 : vector<8x1xf32> to vector<8x2xf32>
    %36 = arith.subf %35, %34 : vector<8x2xf32>
    %cst_17 = arith.constant dense<0.000000e+00> : vector<8x512xf32>
    %37 = tpu.matmul %33, %3, %cst_17 {dimension_numbers = #tpu.dot_dimension_numbers<[1], [0], [0], [1], [0, 0, 1, 1], [], []>} : vector<8x2xf32>, vector<2x512xf32>, vector<8x512xf32> -> vector<8x512xf32>
    %cst_18 = arith.constant dense<0.000000e+00> : vector<8x512xf32>
    %38 = tpu.matmul %36, %3, %cst_18 {dimension_numbers = #tpu.dot_dimension_numbers<[1], [0], [0], [1], [0, 0, 1, 1], [], []>} : vector<8x2xf32>, vector<2x512xf32>, vector<8x512xf32> -> vector<8x512xf32>
    %39 = arith.mulf %17, %37 : vector<8x512xf32>
    %40 = arith.addf %39, %38 : vector<8x512xf32>
    %cst_19 = arith.constant 0.000000e+00 : f32
    %41 = vector.broadcast %cst_19 : f32 to vector<8x512xf32>
    %42 = arith.maximumf %40, %41 : vector<8x512xf32>
    %c1 = arith.constant 1 : index
    %c0_20 = arith.constant 0 : index
    %c0_21 = arith.constant 0 : index
    %43 = vector.load %arg2[%c1, %c0_20, %c0_21] : memref<2x8x72xf32, #tpu.memory_space<vmem>>, vector<1x8x72xf32>
    %44 = vector.shape_cast %43 : vector<1x8x72xf32> to vector<8x72xf32>
    %c17_i32_22 = arith.constant 17 : i32
    %45 = tpu.dynamic_rotate %42 by %c17_i32_22 dim 1 : vector<8x512xf32>, i32 -> vector<8x512xf32>
    %c16_i32_23 = arith.constant 16 : i32
    %46 = tpu.dynamic_rotate %42 by %c16_i32_23 dim 1 : vector<8x512xf32>, i32 -> vector<8x512xf32>
    %c15_i32_24 = arith.constant 15 : i32
    %47 = tpu.dynamic_rotate %42 by %c15_i32_24 dim 1 : vector<8x512xf32>, i32 -> vector<8x512xf32>
    %c1_i32_25 = arith.constant 1 : i32
    %48 = tpu.dynamic_rotate %42 by %c1_i32_25 dim 1 : vector<8x512xf32>, i32 -> vector<8x512xf32>
    %c511_i32_26 = arith.constant 511 : i32
    %49 = tpu.dynamic_rotate %42 by %c511_i32_26 dim 1 : vector<8x512xf32>, i32 -> vector<8x512xf32>
    %c497_i32_27 = arith.constant 497 : i32
    %50 = tpu.dynamic_rotate %42 by %c497_i32_27 dim 1 : vector<8x512xf32>, i32 -> vector<8x512xf32>
    %c496_i32_28 = arith.constant 496 : i32
    %51 = tpu.dynamic_rotate %42 by %c496_i32_28 dim 1 : vector<8x512xf32>, i32 -> vector<8x512xf32>
    %c495_i32_29 = arith.constant 495 : i32
    %52 = tpu.dynamic_rotate %42 by %c495_i32_29 dim 1 : vector<8x512xf32>, i32 -> vector<8x512xf32>
    %53 = tpu.concatenate %45, %46, %47, %48, %42, %49, %50, %51, %52 in 0 : vector<8x512xf32>, vector<8x512xf32>, vector<8x512xf32>, vector<8x512xf32>, vector<8x512xf32>, vector<8x512xf32>, vector<8x512xf32>, vector<8x512xf32>, vector<8x512xf32> -> vector<72x512xf32>
    %54 = arith.mulf %53, %1 : vector<72x512xf32>
    %cst_30 = arith.constant dense<0.000000e+00> : vector<8x512xf32>
    %55 = tpu.matmul %44, %54, %cst_30 {dimension_numbers = #tpu.dot_dimension_numbers<[1], [0], [0], [1], [0, 0, 1, 1], [], []>} : vector<8x72xf32>, vector<72x512xf32>, vector<8x512xf32> -> vector<8x512xf32>
    %56 = vector.extract_strided_slice %4 {offsets = [0, 2], sizes = [8, 1], strides = [1, 1]} : vector<8x4xf32> to vector<8x1xf32>
    %57 = vector.extract_strided_slice %4 {offsets = [0, 3], sizes = [8, 1], strides = [1, 1]} : vector<8x4xf32> to vector<8x1xf32>
    %cst_31 = arith.constant dense<0.000000e+00> : vector<8x2xf32>
    %58 = tpu.matmul %55, %2, %cst_31 {dimension_numbers = #tpu.dot_dimension_numbers<[1], [0], [0], [1], [0, 0, 1, 1], [], []>} : vector<8x512xf32>, vector<512x2xf32>, vector<8x2xf32> -> vector<8x2xf32>
    %cst_32 = arith.constant 3.906250e-03 : f32
    %59 = vector.broadcast %cst_32 : f32 to vector<8x2xf32>
    %60 = arith.mulf %58, %59 : vector<8x2xf32>
    %61 = arith.mulf %55, %55 : vector<8x512xf32>
    %cst_33 = arith.constant dense<0.000000e+00> : vector<8x2xf32>
    %62 = tpu.matmul %61, %2, %cst_33 {dimension_numbers = #tpu.dot_dimension_numbers<[1], [0], [0], [1], [0, 0, 1, 1], [], []>} : vector<8x512xf32>, vector<512x2xf32>, vector<8x2xf32> -> vector<8x2xf32>
    %cst_34 = arith.constant 3.906250e-03 : f32
    %63 = vector.broadcast %cst_34 : f32 to vector<8x2xf32>
    %64 = arith.mulf %62, %63 : vector<8x2xf32>
    %65 = arith.mulf %60, %60 : vector<8x2xf32>
    %66 = arith.subf %64, %65 : vector<8x2xf32>
    %cst_35 = arith.constant 9.99999974E-6 : f32
    %67 = vector.broadcast %cst_35 : f32 to vector<8x2xf32>
    %68 = arith.addf %66, %67 : vector<8x2xf32>
    %69 = math.rsqrt %68 : vector<8x2xf32>
    %70 = vector.broadcast %56 : vector<8x1xf32> to vector<8x2xf32>
    %71 = arith.mulf %69, %70 : vector<8x2xf32>
    %72 = arith.mulf %60, %71 : vector<8x2xf32>
    %73 = vector.broadcast %57 : vector<8x1xf32> to vector<8x2xf32>
    %74 = arith.subf %73, %72 : vector<8x2xf32>
    %cst_36 = arith.constant dense<0.000000e+00> : vector<8x512xf32>
    %75 = tpu.matmul %71, %3, %cst_36 {dimension_numbers = #tpu.dot_dimension_numbers<[1], [0], [0], [1], [0, 0, 1, 1], [], []>} : vector<8x2xf32>, vector<2x512xf32>, vector<8x512xf32> -> vector<8x512xf32>
    %cst_37 = arith.constant dense<0.000000e+00> : vector<8x512xf32>
    %76 = tpu.matmul %74, %3, %cst_37 {dimension_numbers = #tpu.dot_dimension_numbers<[1], [0], [0], [1], [0, 0, 1, 1], [], []>} : vector<8x2xf32>, vector<2x512xf32>, vector<8x512xf32> -> vector<8x512xf32>
    %77 = arith.mulf %55, %75 : vector<8x512xf32>
    %78 = arith.addf %77, %76 : vector<8x512xf32>
    %79 = arith.addf %0, %78 : vector<8x512xf32>
    %c0_38 = arith.constant 0 : index
    %c0_39 = arith.constant 0 : index
    %80 = vector.load %arg7[%c0_38, %c0_39] : memref<8x512xf32, #tpu.memory_space<vmem>>, vector<8x512xf32>
    tpu.vector_store %arg7[%c0_38, %c0_39], %79 {strides = array<i32>} : memref<8x512xf32, #tpu.memory_space<vmem>>, vector<8x512xf32>,
    return
  }
  func.func @transform_0(%arg0: i32) -> (i32, i32) {
    %c0_i32 = arith.constant 0 : i32
    %c0_i32_0 = arith.constant 0 : i32
    return %c0_i32, %arg0 : i32, i32
  }
  func.func @transform_1(%arg0: i32) -> (i32, i32, i32) {
    %c0_i32 = arith.constant 0 : i32
    %c0_i32_0 = arith.constant 0 : i32
    %c0_i32_1 = arith.constant 0 : i32
    %c0_i32_2 = arith.constant 0 : i32
    return %c0_i32, %c0_i32_0, %c0_i32_1 : i32, i32, i32
  }
  func.func @transform_2(%arg0: i32) -> (i32, i32) {
    %c0_i32 = arith.constant 0 : i32
    %c0_i32_0 = arith.constant 0 : i32
    %c0_i32_1 = arith.constant 0 : i32
    return %c0_i32, %c0_i32_0 : i32, i32
  }
  func.func @transform_3(%arg0: i32) -> (i32, i32) {
    %c0_i32 = arith.constant 0 : i32
    %c0_i32_0 = arith.constant 0 : i32
    %c0_i32_1 = arith.constant 0 : i32
    return %c0_i32, %c0_i32_0 : i32, i32
  }
  func.func @transform_4(%arg0: i32) -> (i32, i32) {
    %c0_i32 = arith.constant 0 : i32
    %c0_i32_0 = arith.constant 0 : i32
    %c0_i32_1 = arith.constant 0 : i32
    return %c0_i32, %c0_i32_0 : i32, i32
  }
  func.func @transform_5(%arg0: i32) -> (i32, i32) {
    %c0_i32 = arith.constant 0 : i32
    %c0_i32_0 = arith.constant 0 : i32
    %c0_i32_1 = arith.constant 0 : i32
    return %c0_i32, %c0_i32_0 : i32, i32
  }
  func.func @transform_6(%arg0: i32) -> (i32, i32) {
    %c0_i32 = arith.constant 0 : i32
    %c0_i32_0 = arith.constant 0 : i32
    return %c0_i32, %arg0 : i32, i32
  }
}

</mosaic_0001>

<bundles_post_ra>
// kernel: tpu_custom_call.1
= control target key start
LH: loop header
LB: loop body
LE: loop exit
PB: predicated region body
PF: predicated region fallthrough
CT: control target
= control target key end

     0   :  { %s2351_s25 = smov 111   ;;  %s3758_s0 = inlined_call_operand.vmem [shape: f32[8,512], index: 0, kind: input, shape index: {}]   ;;  %s3759_s1 = inlined_call_operand.vmem [shape: f32[2,8,72], index: 1, kind: input, shape index: {}]   ;;  %s3760_s2 = inlined_call_operand.vmem [shape: f32[8,4], index: 2, kind: input, shape index: {}]   ;;  %s3761_s3 = inlined_call_operand.vmem [shape: f32[72,512], index: 3, kind: input, shape index: {}]   ;;  %s3762_s4 = inlined_call_operand.vmem [shape: f32[512,2], index: 4, kind: input, shape index: {}]   ;;  %s3763_s5 = inlined_call_operand.vmem [shape: f32[2,512], index: 5, kind: input, shape index: {}]   ;;  %s3764_s6 = inlined_call_operand.hbm [shape: f32[8,512], index: 6, kind: output, shape index: {}]  }
   0x1   :  { %v2404_v0 = vld [vmem:[%s3758_s0 + $0x10] sm:$0xff]  ;;  %v2409_v1 = vld [vmem:[%s3758_s0] sm:$0xff]  ;;  %v2418_v2 = vld [vmem:[%s3758_s0 + $0x18] sm:$0xff] }
   0x2   :  { %228 = vrot.lane.b32.xlu1 %v2404_v0, %s2351_s25  ;;  %224 = vrot.lane.b32.xlu0 %v2409_v1, %s2351_s25  ;;  %v2423_v3 = vld [vmem:[%s3758_s0 + $0x8] sm:$0xff] }
   0x6   :  { %230 = vrot.lane.b32.xlu1 %v2418_v2, %s2351_s25  ;;  %226 = vrot.lane.b32.xlu0 %v2423_v3, %s2351_s25 }
   0x7   :  { %11 = vsyncpa [#allocation3], 0  ;;  %s2352_s30 = smov 112   ;;  %s2353_s7 = smov 113   ;;  %v3766_v4 = vmov 0.0   ;;  %v3765_v5 = vlaneseq  ;;  %v2494_v9 = vld [vmem:[%s3761_s3 + $0x108] sm:$0xff] }
   0x8   :  { %s2354_s8 = smov 127   ;;  %s2355_s9 = smov 1   ;;  %341 = vmatprep.mubr.f32.mxu0 %v3766_v4  ;;  %412 = vmatprep.mubr.f32.mxu1 %v3766_v4  ;;  %3865 = vst [vmem:[#allocation6_spill] sm:$0xff] %v2494_v9  ;;  %v63_v10 = vld [vmem:[%s3761_s3 + $0x118] sm:$0xff]  ;;  %v2502_v11 = vld [vmem:[%s3761_s3 + $0x100] sm:$0xff]  ;;  %v62_v12 = vld [vmem:[%s3761_s3 + $0x110] sm:$0xff] }
   0x9   :  { %s2356_s10 = smov 15   ;;  %s2357_s11 = smov 16   ;;  %v2488_v6 = vand.u32 127, %v3765_v5  ;;  %3866 = vst [vmem:[#allocation7_spill] sm:$0xff] %v2502_v11  ;;  %v2521_v25 = vld [vmem:[%s3761_s3 + $0xf8] sm:$0xff]  ;;  %v2526_v26 = vld [vmem:[%s3761_s3 + $0xe8] sm:$0xff] }
   0xa   :  { %213 = vrot.lane.b32.xlu1 %v2423_v3, %s2352_s30  ;;  %211 = vrot.lane.b32.xlu0 %v2409_v1, %s2352_s30  ;;  %s2359_s12 = smov 17   ;;  %3867 = vst [vmem:[#allocation8_spill] sm:$0xff] %v2521_v25  ;;  %3868 = vst [vmem:[#allocation9_spill] sm:$0xff] %v2526_v26  ;;  %v2531_v27 = vld [vmem:[%s3761_s3 + $0xf0] sm:$0xff]  ;;  %v2536_v28 = vld [vmem:[%s3761_s3 + $0xe0] sm:$0xff]  ;;  %vm273_vm8 = vcmask 588800  }
   0xb   :  { %3864 = vst [vmem:[#allocation5_spill] sm:$0xff] %v2488_v6  ;;  %vm232_vm0 = vcmp.lt.s32.totalorder %v2488_v6, 111  ;;  %vm219_vm1 = vcmp.lt.s32.totalorder %v2488_v6, 112  ;;  %3869 = vst [vmem:[#allocation10_spill] sm:$0xff] %v2531_v27  ;;  %vm206_vm2 = vcmp.lt.s32.totalorder %v2488_v6, 113  ;;  %v2554_v41 = vld [vmem:[%s3761_s3 + $0xd8] sm:$0xff] }
   0xc   :  { %3870 = vst [vmem:[#allocation11_spill] sm:$0xff] %v2536_v28  ;;  %3871 = vst [vmem:[#allocation12_spill] sm:$0xff] %v2554_v41  ;;  %v2559_v42 = vld [vmem:[%s3761_s3 + $0xc8] sm:$0xff]  ;;  %v2564_v43 = vld [vmem:[%s3761_s3 + $0xd0] sm:$0xff]  ;;  %vm193_vm3 = vcmp.lt.s32.totalorder %v2488_v6, 127  ;;  %vm180_vm4 = vcmp.lt.s32.totalorder %v2488_v6, 1 }
   0xd   :  { %3872 = vst [vmem:[#allocation13_spill] sm:$0xff] %v2559_v42  ;;  %3873 = vst [vmem:[#allocation14_spill] sm:$0xff] %v2564_v43  ;;  %v2569_v44 = vld [vmem:[%s3761_s3 + $0xc0] sm:$0xff]  ;;  %v2587_v57 = vld [vmem:[%s3761_s3 + $0xb8] sm:$0xff]  ;;  %vm167_vm5 = vcmp.lt.s32.totalorder %v2488_v6, 15  ;;  %vm154_vm6 = vcmp.lt.s32.totalorder %v2488_v6, 16 }
   0xe   :  { %217 = vrot.lane.b32.xlu1 %v2418_v2, %s2352_s30  ;;  %215 = vrot.lane.b32.xlu0 %v2404_v0, %s2352_s30  ;;  %3874 = vst [vmem:[#allocation15_spill] sm:$0xff] %v2569_v44  ;;  %3875 = vst [vmem:[#allocation16_spill] sm:$0xff] %v2587_v57  ;;  %v2592_v58 = vld [vmem:[%s3761_s3 + $0x88] sm:$0xff]  ;;  %v2602_v60 = vld [vmem:[%s3761_s3 + $0xb0] sm:$0xff]  ;;  %vm141_vm7 = vcmp.lt.s32.totalorder %v2488_v6, 17  ;;  %vm743_vm9 = vcmask 1041408  }
   0xf   :  { %3876 = vst [vmem:[#allocation17_spill] sm:$0xff] %v2592_v58  ;;  %v2597_v59 = vld [vmem:[%s3761_s3 + $0xa8] sm:$0xff]  ;;  %3878 = vst [vmem:[#allocation19_spill] sm:$0xff] %v2602_v60  ;;  %v2607_v61 = vld [vmem:[%s3761_s3 + $0x98] sm:$0xff]  ;;  %vm739_vm10 = vcmask 15360  }
  0x10   :  { %3877 = vst [vmem:[#allocation18_spill] sm:$0xff] %v2597_v59  ;;  %3879 = vst [vmem:[#allocation20_spill] sm:$0xff] %v2607_v61  ;;  %v2612_v62 = vld [vmem:[%s3761_s3 + $0xa0] sm:$0xff]  ;;  %v2947_v4 = vld [vmem:[%s3762_s4 + $0x148] sm:$0xff] }
  0x11   :  { %3880 = vst [vmem:[#allocation21_spill] sm:$0xff] %v2612_v62  ;;  %v2942_v5 = vld [vmem:[%s3762_s4 + $0xc0] sm:$0xff] }
  0x12   :  { %200 = vrot.lane.b32.xlu1 %v2423_v3, %s2353_s7  ;;  %198 = vrot.lane.b32.xlu0 %v2409_v1, %s2353_s7  ;;  %v3162_v6 = vld [vmem:[%s3762_s4 + $0x100] sm:$0xff] }
  0x13   :  { %3927 = vst [vmem:[#allocation68_spill] sm:$0xff] %v3162_v6 }
  0x16   :  { %204 = vrot.lane.b32.xlu1 %v2418_v2, %s2353_s7  ;;  %202 = vrot.lane.b32.xlu0 %v2404_v0, %s2353_s7 }
  0x1a   :  { %187 = vrot.lane.b32.xlu1 %v2423_v3, %s2354_s8  ;;  %185 = vrot.lane.b32.xlu0 %v2409_v1, %s2354_s8 }
  0x1e   :  { %191 = vrot.lane.b32.xlu1 %v2418_v2, %s2354_s8  ;;  %189 = vrot.lane.b32.xlu0 %v2404_v0, %s2354_s8 }
  0x22   :  { %174 = vrot.lane.b32.xlu1 %v2423_v3, %s2355_s9  ;;  %172 = vrot.lane.b32.xlu0 %v2409_v1, %s2355_s9 }
  0x26   :  { %178 = vrot.lane.b32.xlu1 %v2418_v2, %s2355_s9  ;;  %176 = vrot.lane.b32.xlu0 %v2404_v0, %s2355_s9 }
  0x2a   :  { %161 = vrot.lane.b32.xlu1 %v2423_v3, %s2356_s10  ;;  %159 = vrot.lane.b32.xlu0 %v2409_v1, %s2356_s10 }
  0x2e   :  { %165 = vrot.lane.b32.xlu1 %v2418_v2, %s2356_s10  ;;  %163 = vrot.lane.b32.xlu0 %v2404_v0, %s2356_s10 }
  0x32   :  { %148 = vrot.lane.b32.xlu1 %v2423_v3, %s2357_s11  ;;  %146 = vrot.lane.b32.xlu0 %v2409_v1, %s2357_s11 }
  0x36   :  { %152 = vrot.lane.b32.xlu1 %v2418_v2, %s2357_s11  ;;  %150 = vrot.lane.b32.xlu0 %v2404_v0, %s2357_s11 }
  0x3a   :  { %133 = vrot.lane.b32.xlu1 %v2423_v3, %s2359_s12  ;;  %131 = vrot.lane.b32.xlu0 %v2409_v1, %s2359_s12 }
  0x3e   :  { %137 = vrot.lane.b32.xlu1 %v2418_v2, %s2359_s12  ;;  %135 = vrot.lane.b32.xlu0 %v2404_v0, %s2359_s12 }
  0x74   :  { %v229_v7 = vpop.permute.xlu1 %228  ;;  %v225_v8 = vpop.permute.xlu0 %224 }
  0x78   :  { %v231_v13 = vpop.permute.xlu1 %230  ;;  %v227_v14 = vpop.permute.xlu0 %226 }
  0x79   :  { %v233_v15 = vsel %vm232_vm0, %v229_v7, %v231_v13  ;;  %v235_v16 = vsel %vm232_vm0, %v225_v8, %v227_v14  ;;  %v234_v17 = vsel %vm232_vm0, %v227_v14, %v229_v7  ;;  %v236_v18 = vsel %vm232_vm0, %v231_v13, %v225_v8 }
  0x7a   :  { %v270_v19 = vmul.f32 %v234_v17, %v2494_v9  ;;  %v272_v20 = vmul.f32 %v236_v18, %v63_v10  ;;  %v269_v21 = vmul.f32 %v235_v16, %v2502_v11  ;;  %v271_v22 = vmul.f32 %v233_v15, %v62_v12  ;;  %v2620_v10 = vld [vmem:[%s3761_s3 + $0x80] sm:$0xff]  ;;  %v2625_v12 = vld [vmem:[%s3761_s3 + $0x90] sm:$0xff] }
  0x7b   :  { %3881 = vst [vmem:[#allocation22_spill] sm:$0xff] %v2620_v10  ;;  %3882 = vst [vmem:[#allocation23_spill] sm:$0xff] %v2625_v12  ;;  %v254_v16 = vmul.f32 %v2592_v58, %v2423_v3  ;;  %v255_v3 = vmul.f32 %v2625_v12, %v2404_v0  ;;  %v2661_v0 = vld [vmem:[%s3761_s3 + $0x70] sm:$0xff]  ;;  %v3050_v12 = vld [vmem:[%s3762_s4 + $0x20] sm:$0xff] }
  0x7c   :  { %v214_v23 = vpop.permute.xlu1 %213  ;;  %291 = vmatprep.subr.mxu0 %v270_v19  ;;  %362 = vmatprep.subr.mxu1 %v272_v20  ;;  %v212_v24 = vpop.permute.xlu0 %211  ;;  %v256_v20 = vmul.f32 %v2607_v61, %v2418_v2  ;;  %3885 = vst [vmem:[#allocation26_spill] sm:$0xff] %v2661_v0  ;;  %3909 = vst [vmem:[#allocation50_spill] sm:$0xff] %v3050_v12  ;;  %v3055_v61 = vld [vmem:[%s3762_s4 + $0x1a0] sm:$0xff] }
  0x7d   :  { %292 = vmatpush1.msra.mxu0 %v269_v21  ;;  %363 = vmatpush1.msra.mxu1 %v271_v22  ;;  %v222_v29 = vsel %vm219_vm1, %v212_v24, %v214_v23  ;;  %v2644_v22 = vld [vmem:[%s3761_s3 + $0x68] sm:$0xff]  ;;  %3910 = vst [vmem:[#allocation51_spill] sm:$0xff] %v3055_v61  ;;  %v3067_v58 = vld [vmem:[%s3762_s4 + $0x120] sm:$0xff] }
  0x7e   :  { %v265_v38 = vmul.f32 %v222_v29, %v2536_v28  ;;  %3883 = vst [vmem:[#allocation24_spill] sm:$0xff] %v2644_v22  ;;  %3912 = vst [vmem:[#allocation53_spill] sm:$0xff] %v3067_v58  ;;  %v3138_v28 = vld [vmem:[%s3762_s4 + $0x80] sm:$0xff] }
  0x7f   :  { %3923 = vst [vmem:[#allocation64_spill] sm:$0xff] %v3138_v28  ;;  %v3150_v11 = vld [vmem:[%s3762_s4] sm:$0xff] }
  0x80   :  { %v218_v30 = vpop.permute.xlu1 %217  ;;  %v216_v31 = vpop.permute.xlu0 %215  ;;  %3925 = vst [vmem:[#allocation66_spill] sm:$0xff] %v3150_v11  ;;  %v3155_v9 = vld [vmem:[%s3762_s4 + $0x180] sm:$0xff] }
  0x81   :  { %v223_v32 = vsel %vm219_vm1, %v218_v30, %v212_v24  ;;  %v220_v33 = vsel %vm219_vm1, %v216_v31, %v218_v30  ;;  %v221_v34 = vsel %vm219_vm1, %v214_v23, %v216_v31  ;;  %v253_v23 = vmul.f32 %v2620_v10, %v2409_v1  ;;  %v2656_v1 = vld [vmem:[%s3761_s3 + $0x60] sm:$0xff]  ;;  %v2666_v31 = vld [vmem:[%s3761_s3 + $0x78] sm:$0xff]  ;;  %3926 = vst [vmem:[#allocation67_spill] sm:$0xff] %v3155_v9 }
  0x82   :  { %v268_v35 = vmul.f32 %v223_v32, %v2521_v25  ;;  %v266_v36 = vmul.f32 %v221_v34, %v2526_v26  ;;  %v267_v37 = vmul.f32 %v220_v33, %v2531_v27  ;;  %3884 = vst [vmem:[#allocation25_spill] sm:$0xff] %v2656_v1  ;;  %3886 = vst [vmem:[#allocation27_spill] sm:$0xff] %v2666_v31  ;;  %v3062_v10 = vld [vmem:[%s3762_s4 + $0x98] sm:$0xff]  ;;  %v3126_v25 = vld [vmem:[%s3762_s4 + $0x8] sm:$0xff] }
  0x83   :  { %3911 = vst [vmem:[#allocation52_spill] sm:$0xff] %v3062_v10  ;;  %3921 = vst [vmem:[#allocation62_spill] sm:$0xff] %v3126_v25  ;;  %v3131_v27 = vld [vmem:[%s3762_s4 + $0x188] sm:$0xff] }
  0x84   :  { %v201_v39 = vpop.permute.xlu1 %200  ;;  %293 = vmatprep.subr.mxu0 %v266_v36  ;;  %364 = vmatprep.subr.mxu1 %v268_v35  ;;  %v199_v40 = vpop.permute.xlu0 %198  ;;  %3922 = vst [vmem:[#allocation63_spill] sm:$0xff] %v3131_v27  ;;  %v3143_v26 = vld [vmem:[%s3762_s4 + $0x108] sm:$0xff] }
  0x85   :  { %294 = vmatpush1.msra.mxu0 %v265_v38  ;;  %365 = vmatpush1.msra.mxu1 %v267_v37  ;;  %v209_v45 = vsel %vm206_vm2, %v199_v40, %v201_v39  ;;  %3924 = vst [vmem:[#allocation65_spill] sm:$0xff] %v3143_v26 }
  0x86   :  { %v261_v54 = vmul.f32 %v209_v45, %v2569_v44  ;;  %v3110_v44 = vld [vmem:[%s3762_s4 + $0x88] sm:$0xff] }
  0x87   :  { %3919 = vst [vmem:[#allocation60_spill] sm:$0xff] %v3110_v44 }
  0x88   :  { %v205_v46 = vpop.permute.xlu1 %204  ;;  %v203_v47 = vpop.permute.xlu0 %202 }
  0x89   :  { %v210_v48 = vsel %vm206_vm2, %v205_v46, %v199_v40  ;;  %v207_v49 = vsel %vm206_vm2, %v203_v47, %v205_v46  ;;  %v208_v50 = vsel %vm206_vm2, %v201_v39, %v203_v47  ;;  %v2681_v40 = vld [vmem:[%s3761_s3 + $0x48] sm:$0xff] }
  0x8a   :  { %v264_v51 = vmul.f32 %v210_v48, %v2554_v41  ;;  %v262_v52 = vmul.f32 %v208_v50, %v2559_v42  ;;  %v263_v53 = vmul.f32 %v207_v49, %v2564_v43  ;;  %3887 = vst [vmem:[#allocation28_spill] sm:$0xff] %v2681_v40  ;;  %v2689_v49 = vld [vmem:[%s3761_s3 + $0x40] sm:$0xff]  ;;  %v2694_v50 = vld [vmem:[%s3761_s3 + $0x50] sm:$0xff] }
  0x8b   :  { %3888 = vst [vmem:[#allocation29_spill] sm:$0xff] %v2689_v49  ;;  %3889 = vst [vmem:[#allocation30_spill] sm:$0xff] %v2694_v50  ;;  %v3098_v41 = vld [vmem:[%s3762_s4 + $0x10] sm:$0xff] }
  0x8c   :  { %v188_v55 = vpop.permute.xlu1 %187  ;;  %295 = vmatprep.subr.mxu0 %v262_v52  ;;  %366 = vmatprep.subr.mxu1 %v264_v51  ;;  %v186_v56 = vpop.permute.xlu0 %185  ;;  %v2699_v51 = vld [vmem:[%s3761_s3 + $0x58] sm:$0xff]  ;;  %3917 = vst [vmem:[#allocation58_spill] sm:$0xff] %v3098_v41  ;;  %v3103_v43 = vld [vmem:[%s3762_s4 + $0x190] sm:$0xff] }
  0x8d   :  { %296 = vmatpush1.msra.mxu0 %v261_v54  ;;  %367 = vmatpush1.msra.mxu1 %v263_v53  ;;  %v196_v63 = vsel %vm193_vm3, %v186_v56, %v188_v55  ;;  %3890 = vst [vmem:[#allocation31_spill] sm:$0xff] %v2699_v51  ;;  %3918 = vst [vmem:[#allocation59_spill] sm:$0xff] %v3103_v43  ;;  %v3115_v42 = vld [vmem:[%s3762_s4 + $0x110] sm:$0xff] }
  0x8e   :  { %v257_v21 = vmul.f32 %v196_v63, %v2612_v62  ;;  %v3086_v62 = vld [vmem:[%s3762_s4 + $0x90] sm:$0xff]  ;;  %3920 = vst [vmem:[#allocation61_spill] sm:$0xff] %v3115_v42 }
  0x8f   :  { %3915 = vst [vmem:[#allocation56_spill] sm:$0xff] %v3086_v62 }
  0x90   :  { %v192_v7 = vpop.permute.xlu1 %191  ;;  %v190_v8 = vpop.permute.xlu0 %189 }
  0x91   :  { %v197_v13 = vsel %vm193_vm3, %v192_v7, %v186_v56  ;;  %v194_v14 = vsel %vm193_vm3, %v190_v8, %v192_v7  ;;  %v195_v15 = vsel %vm193_vm3, %v188_v55, %v190_v8 }
  0x92   :  { %v260_v17 = vmul.f32 %v197_v13, %v2587_v57  ;;  %v258_v18 = vmul.f32 %v195_v15, %v2597_v59  ;;  %v259_v19 = vmul.f32 %v194_v14, %v2602_v60  ;;  %v2714_v13 = vld [vmem:[%s3761_s3 + $0x28] sm:$0xff]  ;;  %v3074_v57 = vld [vmem:[%s3762_s4 + $0x18] sm:$0xff] }
  0x93   :  { %3891 = vst [vmem:[#allocation32_spill] sm:$0xff] %v2714_v13  ;;  %3913 = vst [vmem:[#allocation54_spill] sm:$0xff] %v3074_v57  ;;  %v3079_v60 = vld [vmem:[%s3762_s4 + $0x198] sm:$0xff] }
  0x94   :  { %v175_v24 = vpop.permute.xlu1 %174  ;;  %297 = vmatprep.subr.mxu0 %v258_v18  ;;  %368 = vmatprep.subr.mxu1 %v260_v17  ;;  %v173_v29 = vpop.permute.xlu0 %172  ;;  %v2722_v18 = vld [vmem:[%s3761_s3 + $0x20] sm:$0xff]  ;;  %3914 = vst [vmem:[#allocation55_spill] sm:$0xff] %v3079_v60  ;;  %v3091_v59 = vld [vmem:[%s3762_s4 + $0x118] sm:$0xff] }
  0x95   :  { %v183_v2 = vsel %vm180_vm4, %v173_v29, %v175_v24  ;;  %298 = vmatpush1.msra.mxu0 %v257_v21  ;;  %369 = vmatpush1.msra.mxu1 %v259_v19  ;;  %3892 = vst [vmem:[#allocation33_spill] sm:$0xff] %v2722_v18  ;;  %v2727_v19 = vld [vmem:[%s3761_s3 + $0x30] sm:$0xff]  ;;  %3916 = vst [vmem:[#allocation57_spill] sm:$0xff] %v3091_v59 }
  0x96   :  { %v250_v30 = vmul.f32 %v183_v2, %v2644_v22  ;;  %299 = vmatprep.subr.mxu0 %v254_v16  ;;  %370 = vmatprep.subr.mxu1 %v256_v20  ;;  %3893 = vst [vmem:[#allocation34_spill] sm:$0xff] %v2727_v19  ;;  %v2732_v20 = vld [vmem:[%s3761_s3 + $0x38] sm:$0xff]  ;;  %v3043_v22 = vld [vmem:[%s3762_s4 + $0x128] sm:$0xff] }
  0x97   :  { %300 = vmatpush1.msra.mxu0 %v253_v23  ;;  %371 = vmatpush1.msra.mxu1 %v255_v3  ;;  %3894 = vst [vmem:[#allocation35_spill] sm:$0xff] %v2732_v20  ;;  %3908 = vst [vmem:[#allocation49_spill] sm:$0xff] %v3043_v22 }
  0x98   :  { %v179_v32 = vpop.permute.xlu1 %178  ;;  %v177_v33 = vpop.permute.xlu0 %176  ;;  %301 = vmatprep.subr.mxu0 %v250_v30 }
  0x99   :  { %v184_v34 = vsel %vm180_vm4, %v179_v32, %v173_v29  ;;  %v181_v35 = vsel %vm180_vm4, %v177_v33, %v179_v32  ;;  %v182_v36 = vsel %vm180_vm4, %v175_v24, %v177_v33  ;;  %v2747_v33 = vld [vmem:[%s3761_s3 + $0x8] sm:$0xff] }
  0x9a   :  { %v249_v37 = vmul.f32 %v184_v34, %v2656_v1  ;;  %v251_v38 = vmul.f32 %v182_v36, %v2661_v0  ;;  %v252_v39 = vmul.f32 %v181_v35, %v2666_v31  ;;  %3895 = vst [vmem:[#allocation36_spill] sm:$0xff] %v2747_v33  ;;  %v3026_v0 = vld [vmem:[%s3762_s4 + $0x28] sm:$0xff]  ;;  %v3038_v1 = vld [vmem:[%s3762_s4 + $0xa0] sm:$0xff] }
  0x9b   :  { %3905 = vst [vmem:[#allocation46_spill] sm:$0xff] %v3026_v0  ;;  %v3031_v31 = vld [vmem:[%s3762_s4 + $0x1a8] sm:$0xff]  ;;  %3907 = vst [vmem:[#allocation48_spill] sm:$0xff] %v3038_v1 }
  0x9c   :  { %v162_v45 = vpop.permute.xlu1 %161  ;;  %372 = vmatprep.subr.mxu1 %v252_v39  ;;  %v160_v46 = vpop.permute.xlu0 %159  ;;  %302 = vmatpush1.msra.mxu0 %v249_v37  ;;  %v2760_v39 = vld [vmem:[%s3761_s3 + $0x10] sm:$0xff]  ;;  %3906 = vst [vmem:[#allocation47_spill] sm:$0xff] %v3031_v31 }
  0x9d   :  { %v170_v47 = vsel %vm167_vm5, %v160_v46, %v162_v45  ;;  %373 = vmatpush1.msra.mxu1 %v251_v38  ;;  %v2755_v38 = vld [vmem:[%s3761_s3] sm:$0xff]  ;;  %3897 = vst [vmem:[#allocation38_spill] sm:$0xff] %v2760_v39 }
  0x9e   :  { %v246_v48 = vmul.f32 %v170_v47, %v2681_v40  ;;  %3896 = vst [vmem:[#allocation37_spill] sm:$0xff] %v2755_v38  ;;  %v3019_v40 = vld [vmem:[%s3762_s4 + $0x130] sm:$0xff] }
  0x9f   :  { %3904 = vst [vmem:[#allocation45_spill] sm:$0xff] %v3019_v40 }
  0xa0   :  { %v166_v52 = vpop.permute.xlu1 %165  ;;  %v164_v53 = vpop.permute.xlu0 %163  ;;  %303 = vmatprep.subr.mxu0 %v246_v48 }
  0xa1   :  { %v171_v54 = vsel %vm167_vm5, %v166_v52, %v160_v46  ;;  %v168_v55 = vsel %vm167_vm5, %v164_v53, %v166_v52  ;;  %v169_v56 = vsel %vm167_vm5, %v162_v45, %v164_v53  ;;  %v2765_v45 = vld [vmem:[%s3761_s3 + $0x18] sm:$0xff] }
  0xa2   :  { %v245_v63 = vmul.f32 %v171_v54, %v2689_v49  ;;  %v247_v7 = vmul.f32 %v169_v56, %v2694_v50  ;;  %v248_v8 = vmul.f32 %v168_v55, %v2699_v51  ;;  %3898 = vst [vmem:[#allocation39_spill] sm:$0xff] %v2765_v45  ;;  %v3002_v50 = vld [vmem:[%s3762_s4 + $0x30] sm:$0xff]  ;;  %v3014_v49 = vld [vmem:[%s3762_s4 + $0xa8] sm:$0xff] }
  0xa3   :  { %3901 = vst [vmem:[#allocation42_spill] sm:$0xff] %v3002_v50  ;;  %v3007_v51 = vld [vmem:[%s3762_s4 + $0x1b0] sm:$0xff]  ;;  %3903 = vst [vmem:[#allocation44_spill] sm:$0xff] %v3014_v49 }
  0xa4   :  { %v149_v14 = vpop.permute.xlu1 %148  ;;  %374 = vmatprep.subr.mxu1 %v248_v8  ;;  %v147_v15 = vpop.permute.xlu0 %146  ;;  %304 = vmatpush1.msra.mxu0 %v245_v63  ;;  %v130_v63 = vld [vmem:[%s3759_s1] sm:$0xff]  ;;  %v2787_v8 = vld [vmem:[%s3762_s4 + $0x78] sm:$0xff]  ;;  %3902 = vst [vmem:[#allocation43_spill] sm:$0xff] %v3007_v51 }
  0xa5   :  { %v157_v16 = vsel %vm154_vm6, %v147_v15, %v149_v14  ;;  %375 = vmatpush1.msra.mxu1 %v247_v7  ;;  %v2782_v7 = vld [vmem:[%s3762_s4 + $0xf8] sm:$0xff] }
  0xa6   :  { %v242_v17 = vmul.f32 %v157_v16, %v2714_v13  ;;  %3899 = vst [vmem:[#allocation40_spill] sm:$0xff] %v2782_v7  ;;  %v2803_v16 = vld [vmem:[%s3762_s4 + $0x178] sm:$0xff] }
  0xa7   :  { %v2995_v13 = vld [vmem:[%s3762_s4 + $0x138] sm:$0xff] }
  0xa8   :  { %v153_v21 = vpop.permute.xlu1 %152  ;;  %v151_v23 = vpop.permute.xlu0 %150  ;;  %305 = vmatprep.subr.mxu0 %v242_v17  ;;  %v2810_v17 = vld [vmem:[%s3762_s4 + $0x70] sm:$0xff] }
  0xa9   :  { %v158_v3 = vsel %vm154_vm6, %v153_v21, %v147_v15  ;;  %v155_v24 = vsel %vm154_vm6, %v151_v23, %v153_v21  ;;  %v156_v29 = vsel %vm154_vm6, %v149_v14, %v151_v23  ;;  %v2792_v14 = vld [vmem:[%s3762_s4 + $0x1f8] sm:$0xff]  ;;  %v2798_v15 = vld [vmem:[%s3762_s4 + $0xf0] sm:$0xff]  ;;  %v2822_v23 = vld [vmem:[%s3762_s4 + $0xe8] sm:$0xff] }
  0xaa   :  { %v241_v2 = vmul.f32 %v158_v3, %v2722_v18  ;;  %v243_v30 = vmul.f32 %v156_v29, %v2727_v19  ;;  %v244_v32 = vmul.f32 %v155_v24, %v2732_v20  ;;  %3900 = vst [vmem:[#allocation41_spill] sm:$0xff] %v2792_v14  ;;  %v2815_v21 = vld [vmem:[%s3762_s4 + $0x1f0] sm:$0xff]  ;;  %v2834_v24 = vld [vmem:[%s3762_s4 + $0x68] sm:$0xff]  ;;  %v2978_v19 = vld [vmem:[%s3762_s4 + $0x38] sm:$0xff] }
  0xab   :  { %v2827_v3 = vld [vmem:[%s3762_s4 + $0x170] sm:$0xff]  ;;  %v2839_v29 = vld [vmem:[%s3762_s4 + $0x1e8] sm:$0xff]  ;;  %v2983_v20 = vld [vmem:[%s3762_s4 + $0x1b8] sm:$0xff] }
  0xac   :  { %v134_v34 = vpop.permute.xlu1 %133  ;;  %376 = vmatprep.subr.mxu1 %v244_v32  ;;  %v132_v35 = vpop.permute.xlu0 %131  ;;  %306 = vmatpush1.msra.mxu0 %v241_v2  ;;  %v2846_v2 = vld [vmem:[%s3762_s4 + $0xe0] sm:$0xff]  ;;  %v2990_v18 = vld [vmem:[%s3762_s4 + $0xb0] sm:$0xff] }
  0xad   :  { %v144_v36 = vsel %vm141_vm7, %v132_v35, %v134_v34  ;;  %377 = vmatpush1.msra.mxu1 %v243_v30  ;;  %v2851_v30 = vld [vmem:[%s3762_s4 + $0x168] sm:$0xff]  ;;  %v2858_v32 = vld [vmem:[%s3762_s4 + $0x60] sm:$0xff] }
  0xae   :  { %v238_v37 = vmul.f32 %v144_v36, %v2747_v33  ;;  %v2875_v36 = vld [vmem:[%s3762_s4 + $0x160] sm:$0xff] }
  0xaf   :  { %v2971_v33 = vld [vmem:[%s3762_s4 + $0x140] sm:$0xff] }
  0xb0   :  { %v138_v46 = vpop.permute.xlu1 %137  ;;  %v136_v47 = vpop.permute.xlu0 %135  ;;  %307 = vmatprep.subr.mxu0 %v238_v37  ;;  %v2882_v37 = vld [vmem:[%s3762_s4 + $0x58] sm:$0xff] }
  0xb1   :  { %v145_v48 = vsel %vm141_vm7, %v138_v46, %v132_v35  ;;  %v142_v52 = vsel %vm141_vm7, %v136_v47, %v138_v46  ;;  %v143_v53 = vsel %vm141_vm7, %v134_v34, %v136_v47  ;;  %v2863_v34 = vld [vmem:[%s3762_s4 + $0x1e0] sm:$0xff]  ;;  %v2870_v35 = vld [vmem:[%s3762_s4 + $0xd8] sm:$0xff]  ;;  %v2894_v47 = vld [vmem:[%s3762_s4 + $0xd0] sm:$0xff] }
  0xb2   :  { %v237_v54 = vmul.f32 %v145_v48, %v2755_v38  ;;  %v239_v55 = vmul.f32 %v143_v53, %v2760_v39  ;;  %v240_v56 = vmul.f32 %v142_v52, %v2765_v45  ;;  %v2887_v46 = vld [vmem:[%s3762_s4 + $0x1d8] sm:$0xff]  ;;  %v2906_v52 = vld [vmem:[%s3762_s4 + $0x50] sm:$0xff]  ;;  %v2954_v39 = vld [vmem:[%s3762_s4 + $0x40] sm:$0xff] }
  0xb3   :  { %v2899_v48 = vld [vmem:[%s3762_s4 + $0x158] sm:$0xff]  ;;  %v2911_v53 = vld [vmem:[%s3762_s4 + $0x1d0] sm:$0xff]  ;;  %v2959_v45 = vld [vmem:[%s3762_s4 + $0x1c0] sm:$0xff] }
  0xb4   :  { %308 = vmatpush1.msra.mxu0 %v237_v54  ;;  %378 = vmatprep.subr.mxu1 %v240_v56  ;;  %v2918_v54 = vld [vmem:[%s3762_s4 + $0xc8] sm:$0xff]  ;;  %v2966_v38 = vld [vmem:[%s3762_s4 + $0xb8] sm:$0xff] }
  0xb5   :  { %1951 = vmatmul.mubr.msk.f32.vlgmr.msra.gmra.mxu0 %vm273_vm8, %v130_v63  ;;  %379 = vmatpush1.msra.mxu1 %v239_v55  ;;  %v2923_v55 = vld [vmem:[%s3762_s4 + $0x150] sm:$0xff]  ;;  %v2930_v56 = vld [vmem:[%s3762_s4 + $0x48] sm:$0xff] }
  0xb6   :  { %1952 = vmatmul.mubr.msk.f32.vlgmr.msra.gmra.mxu1 %vm273_vm8, %v130_v63  ;;  %1980 = vmatprep.subr.mxu0 %v2782_v7  ;;  %v2935_v63 = vld [vmem:[%s3762_s4 + $0x1c8] sm:$0xff] }
  0xb7   :  { %1981 = vmatpush3.msra.mxu0 %v2787_v8  ;;  %2015 = vmatprep.subr.mxu1 %v2792_v14 }
  0xb8   :  { %1982 = vmatprep.subr.mxu0 %v2798_v15  ;;  %2016 = vmatpush3.msra.mxu1 %v2803_v16 }
  0xb9   :  { %1983 = vmatpush3.msra.mxu0 %v2810_v17  ;;  %2017 = vmatprep.subr.mxu1 %v2815_v21 }
  0xba   :  { %1984 = vmatprep.subr.mxu0 %v2822_v23  ;;  %2018 = vmatpush3.msra.mxu1 %v2827_v3 }
  0xbb   :  { %1985 = vmatpush3.msra.mxu0 %v2834_v24  ;;  %2019 = vmatprep.subr.mxu1 %v2839_v29 }
  0xbc   :  { %1986 = vmatprep.subr.mxu0 %v2846_v2  ;;  %2020 = vmatpush3.msra.mxu1 %v2851_v30 }
  0xbd   :  { %1987 = vmatpush3.msra.mxu0 %v2858_v32  ;;  %2021 = vmatprep.subr.mxu1 %v2863_v34 }
  0xbe   :  { %1988 = vmatprep.subr.mxu0 %v2870_v35  ;;  %2022 = vmatpush3.msra.mxu1 %v2875_v36 }
  0xbf   :  { %1989 = vmatpush3.msra.mxu0 %v2882_v37  ;;  %2023 = vmatprep.subr.mxu1 %v2887_v46 }
  0xc0   :  { %1990 = vmatprep.subr.mxu0 %v2894_v47  ;;  %2024 = vmatpush3.msra.mxu1 %v2899_v48 }
  0xc1   :  { %1991 = vmatpush3.msra.mxu0 %v2906_v52  ;;  %2025 = vmatprep.subr.mxu1 %v2911_v53 }
  0xc2   :  { %1992 = vmatprep.subr.mxu0 %v2918_v54  ;;  %2026 = vmatpush3.msra.mxu1 %v2923_v55 }
  0xc3   :  { %1993 = vmatpush3.msra.mxu0 %v2930_v56  ;;  %2027 = vmatprep.subr.mxu1 %v2935_v63 }
  0xc4   :  { %1994 = vmatprep.subr.mxu0 %v2942_v5  ;;  %2028 = vmatpush3.msra.mxu1 %v2947_v4 }
  0xc5   :  { %1995 = vmatpush3.msra.mxu0 %v2954_v39  ;;  %2029 = vmatprep.subr.mxu1 %v2959_v45 }
  0xc6   :  { %1996 = vmatprep.subr.mxu0 %v2966_v38  ;;  %2030 = vmatpush3.msra.mxu1 %v2971_v33 }
  0xc7   :  { %1997 = vmatpush3.msra.mxu0 %v2978_v19  ;;  %2031 = vmatprep.subr.mxu1 %v2983_v20 }
  0xc8   :  { %1998 = vmatprep.subr.mxu0 %v2990_v18  ;;  %2032 = vmatpush3.msra.mxu1 %v2995_v13 }
  0xc9   :  { %1999 = vmatpush3.msra.mxu0 %v3002_v50  ;;  %2033 = vmatprep.subr.mxu1 %v3007_v51 }
  0xca   :  { %2000 = vmatprep.subr.mxu0 %v3014_v49  ;;  %2034 = vmatpush3.msra.mxu1 %v3019_v40 }
  0xcb   :  { %2001 = vmatpush3.msra.mxu0 %v3026_v0  ;;  %2035 = vmatprep.subr.mxu1 %v3031_v31 }
  0xcc   :  { %2002 = vmatprep.subr.mxu0 %v3038_v1  ;;  %2036 = vmatpush3.msra.mxu1 %v3043_v22 }
  0xcd   :  { %2003 = vmatpush3.msra.mxu0 %v3050_v12  ;;  %2037 = vmatprep.subr.mxu1 %v3055_v61 }
  0xce   :  { %2004 = vmatprep.subr.mxu0 %v3062_v10  ;;  %2038 = vmatpush3.msra.mxu1 %v3067_v58 }
  0xcf   :  { %2005 = vmatpush3.msra.mxu0 %v3074_v57  ;;  %2039 = vmatprep.subr.mxu1 %v3079_v60 }
  0xd0   :  { %2006 = vmatprep.subr.mxu0 %v3086_v62  ;;  %2040 = vmatpush3.msra.mxu1 %v3091_v59 }
  0xd1   :  { %2007 = vmatpush3.msra.mxu0 %v3098_v41  ;;  %2041 = vmatprep.subr.mxu1 %v3103_v43 }
  0xd2   :  { %2008 = vmatprep.subr.mxu0 %v3110_v44  ;;  %2042 = vmatpush3.msra.mxu1 %v3115_v42 }
  0xd3   :  { %2009 = vmatpush3.msra.mxu0 %v3126_v25  ;;  %2043 = vmatprep.subr.mxu1 %v3131_v27 }
  0xd4   :  { %2010 = vmatprep.subr.mxu0 %v3138_v28  ;;  %2044 = vmatpush3.msra.mxu1 %v3143_v26  ;;  %v3170_v26 = vld [vmem:[%s3760_s2] sm:$0xff]  ;;  %v2360_v28 = vmov 0  }
  0xd5   :  { %2011 = vmatpush3.msra.mxu0 %v3150_v11  ;;  %2045 = vmatprep.subr.mxu1 %v3155_v9  ;;  %3928 = vst [vmem:[#allocation69_spill] sm:$0xff] %v3170_v26  ;;  %v2361_v11 = vmov 1  }
  0xd6   :  { %2046 = vmatpush3.msra.mxu1 %v3162_v6  ;;  %2050 = vmatprep.subr.mxu0 %v2782_v7 }
  0xd7   :  { %2085 = vmatprep.subr.mxu1 %v2792_v14  ;;  %2275 = vset.pattern.permute.xlu0 %v2360_v28  ;;  %v3929_v28 = vld [vmem:[#allocation63_spill] sm:$0xff] }
  0xd8   :  { %2276 = vset.pattern.permute.xlu1 %v2361_v11  ;;  %711 = vperm.xlu0 %2275, %v3170_v26  }
  0xd9   :  { %717 = vperm.xlu1 %2276, %v3170_v26   ;;  %v3931_v26 = vld [vmem:[#allocation65_spill] sm:$0xff] }
 0x175   :  { %v3174_v9 = vpop.f32.mrf.mxu0 }
 0x176   :  { %v3176_v6 = vpop.f32.mrf.mxu1 }
 0x177   :  { %v3178_v7 = vpop.f32.mrf.mxu0 }
 0x178   :  { %v561_v14 = vmul.f32 %v3178_v7, %v3178_v7  ;;  %v3182_v27 = vpop.f32.mrf.mxu1  ;;  %483 = vmatprep.mubr.f32.mxu0 %v3178_v7 }
 0x179   :  { %v563_v11 = vmul.f32 %v3182_v27, %v3182_v27  ;;  %484 = vmatmul.mubr.f32.vlgmr.msra.gmra.mxu0 %v3174_v9  ;;  %553 = vmatprep.mubr.f32.mxu1 %v3182_v27 }
 0x17a   :  { %2051 = vmatpush3.msra.mxu0 %v2787_v8  ;;  %554 = vmatmul.mubr.f32.vlgmr.msra.gmra.mxu1 %v3176_v6 }
 0x17b   :  { %2052 = vmatprep.subr.mxu0 %v2798_v15  ;;  %628 = vmatprep.mubr.f32.mxu0 %v561_v14  ;;  %v560_v14 = vmul.f32 %v3174_v9, %v3174_v9 }
 0x17c   :  { %2086 = vmatpush3.msra.mxu1 %v2803_v16  ;;  %2053 = vmatpush3.msra.mxu0 %v2810_v17 }
 0x17d   :  { %2087 = vmatprep.subr.mxu1 %v2815_v21  ;;  %698 = vmatprep.mubr.f32.mxu1 %v563_v11  ;;  %v3930_v11 = vld [vmem:[#allocation64_spill] sm:$0xff] }
 0x17e   :  { %2054 = vmatprep.subr.mxu0 %v2822_v23  ;;  %2088 = vmatpush3.msra.mxu1 %v2827_v3 }
 0x17f   :  { %2055 = vmatpush3.msra.mxu0 %v2834_v24  ;;  %2089 = vmatprep.subr.mxu1 %v2839_v29 }
 0x180   :  { %2056 = vmatprep.subr.mxu0 %v2846_v2  ;;  %2090 = vmatpush3.msra.mxu1 %v2851_v30 }
 0x181   :  { %2057 = vmatpush3.msra.mxu0 %v2858_v32  ;;  %2091 = vmatprep.subr.mxu1 %v2863_v34 }
 0x182   :  { %2058 = vmatprep.subr.mxu0 %v2870_v35  ;;  %2092 = vmatpush3.msra.mxu1 %v2875_v36 }
 0x183   :  { %2059 = vmatpush3.msra.mxu0 %v2882_v37  ;;  %2093 = vmatprep.subr.mxu1 %v2887_v46 }
 0x184   :  { %2060 = vmatprep.subr.mxu0 %v2894_v47  ;;  %2094 = vmatpush3.msra.mxu1 %v2899_v48 }
 0x185   :  { %2061 = vmatpush3.msra.mxu0 %v2906_v52  ;;  %2095 = vmatprep.subr.mxu1 %v2911_v53 }
 0x186   :  { %2062 = vmatprep.subr.mxu0 %v2918_v54  ;;  %2096 = vmatpush3.msra.mxu1 %v2923_v55 }
 0x187   :  { %2063 = vmatpush3.msra.mxu0 %v2930_v56  ;;  %2097 = vmatprep.subr.mxu1 %v2935_v63 }
 0x188   :  { %2064 = vmatprep.subr.mxu0 %v2942_v5  ;;  %2098 = vmatpush3.msra.mxu1 %v2947_v4 }
 0x189   :  { %2065 = vmatpush3.msra.mxu0 %v2954_v39  ;;  %2099 = vmatprep.subr.mxu1 %v2959_v45 }
 0x18a   :  { %2066 = vmatprep.subr.mxu0 %v2966_v38  ;;  %2100 = vmatpush3.msra.mxu1 %v2971_v33 }
 0x18b   :  { %2067 = vmatpush3.msra.mxu0 %v2978_v19  ;;  %2101 = vmatprep.subr.mxu1 %v2983_v20 }
 0x18c   :  { %2068 = vmatprep.subr.mxu0 %v2990_v18  ;;  %2102 = vmatpush3.msra.mxu1 %v2995_v13 }
 0x18d   :  { %2069 = vmatpush3.msra.mxu0 %v3002_v50  ;;  %2103 = vmatprep.subr.mxu1 %v3007_v51 }
 0x18e   :  { %2070 = vmatprep.subr.mxu0 %v3014_v49  ;;  %2104 = vmatpush3.msra.mxu1 %v3019_v40 }
 0x18f   :  { %2071 = vmatpush3.msra.mxu0 %v3026_v0  ;;  %2105 = vmatprep.subr.mxu1 %v3031_v31 }
 0x190   :  { %2072 = vmatprep.subr.mxu0 %v3038_v1  ;;  %2106 = vmatpush3.msra.mxu1 %v3043_v22 }
 0x191   :  { %2073 = vmatpush3.msra.mxu0 %v3050_v12  ;;  %2107 = vmatprep.subr.mxu1 %v3055_v61 }
 0x192   :  { %2074 = vmatprep.subr.mxu0 %v3062_v10  ;;  %2108 = vmatpush3.msra.mxu1 %v3067_v58 }
 0x193   :  { %2075 = vmatpush3.msra.mxu0 %v3074_v57  ;;  %2109 = vmatprep.subr.mxu1 %v3079_v60  ;;  %v128_v60 = vld [vmem:[%s3763_s5] sm:$0xff] }
 0x194   :  { %2076 = vmatprep.subr.mxu0 %v3086_v62  ;;  %2110 = vmatpush3.msra.mxu1 %v3091_v59  ;;  %v3932_v59 = vld [vmem:[#allocation66_spill] sm:$0xff] }
 0x195   :  { %2077 = vmatpush3.msra.mxu0 %v3098_v41  ;;  %2111 = vmatprep.subr.mxu1 %v3103_v43  ;;  %v562_v41 = vmul.f32 %v3176_v6, %v3176_v6  ;;  %v3933_v43 = vld [vmem:[#allocation67_spill] sm:$0xff] }
 0x196   :  { %2078 = vmatprep.subr.mxu0 %v3110_v44  ;;  %2112 = vmatpush3.msra.mxu1 %v3115_v42  ;;  %v3934_v42 = vld [vmem:[#allocation68_spill] sm:$0xff] }
 0x197   :  { %2079 = vmatpush3.msra.mxu0 %v3126_v25  ;;  %2113 = vmatprep.subr.mxu1 %v3929_v28  ;;  %v3935_v25 = vmov 0.0   ;;  %v2362_v28 = vmov 1983009808  }
 0x198   :  { %2080 = vmatprep.subr.mxu0 %v3930_v11  ;;  %2114 = vmatpush3.msra.mxu1 %v3931_v26  ;;  %v724_v44 = vunpack.c.l.s4 %v2362_v28  ;;  %v3936_v11 = vlaneseq }
 0x199   :  { %2081 = vmatpush3.msra.mxu0 %v3932_v59  ;;  %2115 = vmatprep.subr.mxu1 %v3933_v43 }
 0x19a   :  { %629 = vmatmul.mubr.f32.vlgmr.msra.gmra.mxu0 %v560_v14  ;;  %2116 = vmatpush3.msra.mxu1 %v3934_v42  ;;  %v727_v62 = vshrl.u32 %v3936_v11, 7  ;;  %v725_v26 = vunpack.c.0.s8 %v724_v44  ;;  %v722_v14 = vcombine.high %v128_v60, %v128_v60 }
 0x19b   :  { %699 = vmatmul.mubr.f32.vlgmr.msra.gmra.mxu1 %v562_v41  ;;  %816 = vmatprep.mubr.f32.mxu0 %v3935_v25 }
 0x19c   :  { %887 = vmatprep.mubr.f32.mxu1 %v3935_v25  ;;  %v728_v59 = vsub.s32 %v725_v26, %v727_v62 }
 0x19e   :  { %v3262_v57 = vrot.slane %v128_v60, %v728_v59  ;;  %v3268_v42 = vrot.slane %v722_v14, %v728_v59 }
 0x1a0   :  { %v3266_v41 = vcombine.high %v3262_v57, %v3262_v57  ;;  %v3276_v44 = vcombine.high %v3268_v42, %v3268_v42 }
 0x1a2   :  { %3937 = vst [vmem:[#allocation70_spill] sm:$0xff] %v3266_v41  ;;  %1953 = vmatprep.subr.msk.mxu0 %vm743_vm9, %v3266_v41  ;;  %3938 = vst [vmem:[#allocation71_spill] sm:$0xff] %v3276_v44  ;;  %1956 = vmatprep.subr.msk.mxu1 %vm743_vm9, %v3276_v44 }
 0x1a3   :  { %1954 = vmatpush1.msk.msra.mxu0 %vm743_vm9, %v3262_v57  ;;  %1957 = vmatpush1.msk.msra.mxu1 %vm743_vm9, %v3268_v42 }
 0x1a4   :  { %1959 = vmatprep.subr.msk.mxu0 %vm743_vm9, %v3266_v41  ;;  %1962 = vmatprep.subr.msk.mxu1 %vm743_vm9, %v3276_v44  ;;  %v712_v44 = vpop.permute.xlu0 %711 }
 0x239   :  { %v2012_v26 = vpop.f32.mrf.mxu0 }
 0x23a   :  { %v2047_v59 = vpop.f32.mrf.mxu1 }
 0x23b   :  { %v2013_v60 = vpop.f32.mrf.mxu0 }
 0x23c   :  { %v2048_v62 = vpop.f32.mrf.mxu1  ;;  %v2014_v28 = vadd.f32 %v2013_v60, %v2012_v26  ;;  %v718_v26 = vpop.permute.xlu1 %717 }
 0x23d   :  { %v2049_v11 = vadd.f32 %v2048_v62, %v2047_v59 }
 0x23f   :  { %v556_v14 = vadd.f32 %v2049_v11, %v2014_v28 }
 0x241   :  { %v559_v12 = vmul.f32 0.00390625, %v556_v14  ;;  %v3975_v14 = vld [vmem:[#allocation41_spill] sm:$0xff] }
 0x243   :  { %v705_v31 = vmul.f32 %v559_v12, %v559_v12 }
 0x25a   :  { %v2082_v43 = vpop.f32.mrf.mxu0 }
 0x25b   :  { %v2117_v58 = vpop.f32.mrf.mxu1 }
 0x25c   :  { %v2083_v10 = vpop.f32.mrf.mxu0 }
 0x25d   :  { %v2084_v41 = vadd.f32 %v2083_v10, %v2082_v43  ;;  %v2118_v61 = vpop.f32.mrf.mxu1 }
 0x25e   :  { %v2119_v22 = vadd.f32 %v2118_v61, %v2117_v58 }
 0x260   :  { %v701_v1 = vadd.f32 %v2119_v22, %v2084_v41 }
 0x262   :  { %v704_v0 = vmul.f32 0.00390625, %v701_v1 }
 0x264   :  { %v706_v40 = vsub.f32 %v704_v0, %v705_v31 }
 0x266   :  { %v707_v49 = vadd.f32 1e-05, %v706_v40 }
 0x268   :  { %2280 = vrsqrt.f32 %v707_v49 }
 0x275   :  { %v2281_v51 = vpop.eup %2280 }
 0x276   :  { %v714_v50 = vmul.f32 %v2281_v51, %v712_v44 }
 0x278   :  { %1955 = vmatmul.mubr.msk.f32.vlgmr.msra.gmra.mxu0 %vm739_vm10, %v714_v50  ;;  %1958 = vmatmul.mubr.msk.f32.vlgmr.msra.gmra.mxu1 %vm739_vm10, %v714_v50  ;;  %v715_v59 = vmul.f32 %v714_v50, %v559_v12 }
 0x279   :  { %1960 = vmatpush1.msk.msra.mxu0 %vm743_vm9, %v3262_v57  ;;  %961 = vmatprep.mubr.f32.mxu0 %v3935_v25 }
 0x27a   :  { %v720_v43 = vsub.f32 %v718_v26, %v715_v59  ;;  %1963 = vmatpush1.msk.msra.mxu1 %vm743_vm9, %v3268_v42  ;;  %1032 = vmatprep.mubr.f32.mxu1 %v3935_v25 }
 0x27c   :  { %1961 = vmatmul.mubr.msk.f32.vlgmr.msra.gmra.mxu0 %vm739_vm10, %v720_v43  ;;  %1964 = vmatmul.mubr.msk.f32.vlgmr.msra.gmra.mxu1 %vm739_vm10, %v720_v43 }
 0x27d   :  { %1252 = vmatprep.mubr.f32.mxu0 %v3935_v25  ;;  %1323 = vmatprep.mubr.f32.mxu1 %v3935_v25 }
 0x338   :  { %v818_v58 = vpop.f32.mrf.mxu0  ;;  %v889_v61 = vpop.f32.mrf.mxu1 }
 0x339   :  { %v1039_v22 = vmul.f32 %v818_v58, %v3174_v9  ;;  %v1041_v31 = vmul.f32 %v889_v61, %v3176_v6  ;;  %v3940_v58 = vld [vmem:[#allocation6_spill] sm:$0xff] }
 0x33a   :  { %v820_v10 = vpop.f32.mrf.mxu0  ;;  %v891_v12 = vpop.f32.mrf.mxu1 }
 0x33b   :  { %v1040_v40 = vmul.f32 %v820_v10, %v3178_v7  ;;  %v1042_v41 = vmul.f32 %v891_v12, %v3182_v27  ;;  %v3941_v12 = vld [vmem:[#allocation7_spill] sm:$0xff] }
 0x33c   :  { %v963_v1 = vpop.f32.mrf.mxu0  ;;  %v1034_v0 = vpop.f32.mrf.mxu1 }
 0x33d   :  { %v1043_v49 = vadd.f32 %v1039_v22, %v963_v1  ;;  %v1045_v60 = vadd.f32 %v1041_v31, %v1034_v0  ;;  %v2284_v31 = vld [vmem:[%s3761_s3 + $0x110] sm:$0xff] }
 0x33e   :  { %v965_v50 = vpop.f32.mrf.mxu0  ;;  %v1036_v51 = vpop.f32.mrf.mxu1 }
 0x33f   :  { %v3302_v44 = vmax.f32 %v1043_v49, 0.0  ;;  %v1044_v62 = vadd.f32 %v1040_v40, %v965_v50  ;;  %v1046_v11 = vadd.f32 %v1042_v41, %v1036_v51  ;;  %v3308_v9 = vmax.f32 %v1045_v60, 0.0  ;;  %v2285_v49 = vld [vmem:[%s3761_s3 + $0x118] sm:$0xff] }
 0x341   :  { %v3304_v28 = vmax.f32 %v1044_v62, 0.0  ;;  %1137 = vrot.lane.b32.xlu1 %v3302_v44, %s2351_s25  ;;  %v3312_v6 = vmax.f32 %v1046_v11, 0.0 }
 0x343   :  { %1139 = vrot.lane.b32.xlu0 %v3304_v28, %s2351_s25 }
 0x345   :  { %1141 = vrot.lane.b32.xlu1 %v3308_v9, %s2351_s25 }
 0x347   :  { %1143 = vrot.lane.b32.xlu0 %v3312_v6, %s2351_s25 }
 0x349   :  { %1125 = vrot.lane.b32.xlu1 %v3302_v44, %s2352_s30 }
 0x34b   :  { %1127 = vrot.lane.b32.xlu0 %v3304_v28, %s2352_s30 }
 0x34d   :  { %1129 = vrot.lane.b32.xlu1 %v3308_v9, %s2352_s30 }
 0x34f   :  { %1131 = vrot.lane.b32.xlu0 %v3312_v6, %s2352_s30 }
 0x351   :  { %1113 = vrot.lane.b32.xlu1 %v3302_v44, %s2353_s7 }
 0x353   :  { %1115 = vrot.lane.b32.xlu0 %v3304_v28, %s2353_s7 }
 0x355   :  { %1117 = vrot.lane.b32.xlu1 %v3308_v9, %s2353_s7 }
 0x357   :  { %1119 = vrot.lane.b32.xlu0 %v3312_v6, %s2353_s7 }
 0x359   :  { %1101 = vrot.lane.b32.xlu1 %v3302_v44, %s2354_s8 }
 0x35b   :  { %1103 = vrot.lane.b32.xlu0 %v3304_v28, %s2354_s8 }
 0x35d   :  { %1105 = vrot.lane.b32.xlu1 %v3308_v9, %s2354_s8 }
 0x35f   :  { %1107 = vrot.lane.b32.xlu0 %v3312_v6, %s2354_s8 }
 0x361   :  { %1089 = vrot.lane.b32.xlu1 %v3302_v44, %s2355_s9 }
 0x363   :  { %1091 = vrot.lane.b32.xlu0 %v3304_v28, %s2355_s9 }
 0x365   :  { %1093 = vrot.lane.b32.xlu1 %v3308_v9, %s2355_s9 }
 0x367   :  { %1095 = vrot.lane.b32.xlu0 %v3312_v6, %s2355_s9 }
 0x369   :  { %1077 = vrot.lane.b32.xlu1 %v3302_v44, %s2356_s10 }
 0x36b   :  { %1079 = vrot.lane.b32.xlu0 %v3304_v28, %s2356_s10 }
 0x36d   :  { %1081 = vrot.lane.b32.xlu1 %v3308_v9, %s2356_s10 }
 0x36f   :  { %1083 = vrot.lane.b32.xlu0 %v3312_v6, %s2356_s10 }
 0x371   :  { %1065 = vrot.lane.b32.xlu1 %v3302_v44, %s2357_s11 }
 0x373   :  { %1067 = vrot.lane.b32.xlu0 %v3304_v28, %s2357_s11 }
 0x375   :  { %1069 = vrot.lane.b32.xlu1 %v3308_v9, %s2357_s11 }
 0x377   :  { %1071 = vrot.lane.b32.xlu0 %v3312_v6, %s2357_s11 }
 0x379   :  { %1053 = vrot.lane.b32.xlu1 %v3302_v44, %s2359_s12 }
 0x37b   :  { %1055 = vrot.lane.b32.xlu0 %v3304_v28, %s2359_s12 }
 0x37d   :  { %1057 = vrot.lane.b32.xlu1 %v3308_v9, %s2359_s12 }
 0x37f   :  { %1059 = vrot.lane.b32.xlu0 %v3312_v6, %s2359_s12 }
 0x3b3   :  { %v1138_v27 = vpop.permute.xlu1 %1137 }
 0x3b5   :  { %v1140_v7 = vpop.permute.xlu0 %1139 }
 0x3b6   :  { %v1147_v26 = vsel %vm232_vm0, %v1138_v27, %v1140_v7 }
 0x3b7   :  { %v1142_v59 = vpop.permute.xlu1 %1141  ;;  %v1181_v22 = vmul.f32 %v1147_v26, %v3941_v12 }
 0x3b8   :  { %v1146_v43 = vsel %vm232_vm0, %v1140_v7, %v1142_v59 }
 0x3b9   :  { %v1182_v61 = vmul.f32 %v1146_v43, %v3940_v58  ;;  %v1144_v10 = vpop.permute.xlu0 %1143 }
 0x3ba   :  { %v1145_v1 = vsel %vm232_vm0, %v1142_v59, %v1144_v10  ;;  %v1148_v0 = vsel %vm232_vm0, %v1144_v10, %v1138_v27  ;;  %v3942_v27 = vld [vmem:[#allocation9_spill] sm:$0xff]  ;;  %v3943_v59 = vld [vmem:[#allocation11_spill] sm:$0xff]  ;;  %v3944_v10 = vld [vmem:[#allocation10_spill] sm:$0xff] }
 0x3bb   :  { %v1183_v40 = vmul.f32 %v2284_v31, %v1145_v1  ;;  %v1184_v50 = vmul.f32 %v2285_v49, %v1148_v0  ;;  %v1126_v51 = vpop.permute.xlu1 %1125  ;;  %1202 = vmatprep.subr.mxu0 %v1182_v61 }
 0x3bc   :  { %1203 = vmatpush1.msra.mxu0 %v1181_v22  ;;  %v3945_v22 = vld [vmem:[#allocation8_spill] sm:$0xff] }
 0x3bd   :  { %1273 = vmatprep.subr.mxu1 %v1184_v50  ;;  %v1128_v41 = vpop.permute.xlu0 %1127 }
 0x3be   :  { %1274 = vmatpush1.msra.mxu1 %v1183_v40  ;;  %v1135_v60 = vsel %vm219_vm1, %v1126_v51, %v1128_v41 }
 0x3bf   :  { %v1130_v62 = vpop.permute.xlu1 %1129  ;;  %v1177_v43 = vmul.f32 %v1135_v60, %v3943_v59 }
 0x3c0   :  { %v1134_v11 = vsel %vm219_vm1, %v1128_v41, %v1130_v62  ;;  %v3946_v41 = vld [vmem:[#allocation13_spill] sm:$0xff] }
 0x3c1   :  { %v1178_v7 = vmul.f32 %v1134_v11, %v3942_v27  ;;  %v1132_v26 = vpop.permute.xlu0 %1131 }
 0x3c2   :  { %v1133_v58 = vsel %vm219_vm1, %v1130_v62, %v1132_v26  ;;  %v1136_v61 = vsel %vm219_vm1, %v1132_v26, %v1126_v51  ;;  %v3947_v62 = vld [vmem:[#allocation15_spill] sm:$0xff]  ;;  %v3948_v26 = vld [vmem:[#allocation14_spill] sm:$0xff] }
 0x3c3   :  { %v1179_v12 = vmul.f32 %v1133_v58, %v3944_v10  ;;  %v1180_v1 = vmul.f32 %v1136_v61, %v3945_v22  ;;  %v1114_v0 = vpop.permute.xlu1 %1113  ;;  %1204 = vmatprep.subr.mxu0 %v1178_v7 }
 0x3c4   :  { %1205 = vmatpush1.msra.mxu0 %v1177_v43  ;;  %v3949_v43 = vld [vmem:[#allocation12_spill] sm:$0xff] }
 0x3c5   :  { %1275 = vmatprep.subr.mxu1 %v1180_v1  ;;  %v1116_v31 = vpop.permute.xlu0 %1115 }
 0x3c6   :  { %1276 = vmatpush1.msra.mxu1 %v1179_v12  ;;  %v1123_v40 = vsel %vm206_vm2, %v1114_v0, %v1116_v31 }
 0x3c7   :  { %v1118_v49 = vpop.permute.xlu1 %1117  ;;  %v1173_v11 = vmul.f32 %v1123_v40, %v3947_v62 }
 0x3c8   :  { %v1122_v50 = vsel %vm206_vm2, %v1116_v31, %v1118_v49  ;;  %v3950_v31 = vld [vmem:[#allocation18_spill] sm:$0xff] }
 0x3c9   :  { %v1174_v60 = vmul.f32 %v1122_v50, %v3946_v41  ;;  %v1120_v51 = vpop.permute.xlu0 %1119 }
 0x3ca   :  { %v1121_v27 = vsel %vm206_vm2, %v1118_v49, %v1120_v51  ;;  %v1124_v7 = vsel %vm206_vm2, %v1120_v51, %v1114_v0  ;;  %v3951_v49 = vld [vmem:[#allocation21_spill] sm:$0xff]  ;;  %v3952_v51 = vld [vmem:[#allocation19_spill] sm:$0xff] }
 0x3cb   :  { %v1175_v59 = vmul.f32 %v1121_v27, %v3948_v26  ;;  %v1176_v58 = vmul.f32 %v1124_v7, %v3949_v43  ;;  %v1102_v61 = vpop.permute.xlu1 %1101  ;;  %1206 = vmatprep.subr.mxu0 %v1174_v60  ;;  %v3954_v26 = vld [vmem:[#allocation17_spill] sm:$0xff]  ;;  %v3955_v43 = vld [vmem:[#allocation22_spill] sm:$0xff] }
 0x3cc   :  { %1207 = vmatpush1.msra.mxu0 %v1173_v11  ;;  %v3953_v11 = vld [vmem:[#allocation16_spill] sm:$0xff] }
 0x3cd   :  { %1277 = vmatprep.subr.mxu1 %v1176_v58  ;;  %v1104_v10 = vpop.permute.xlu0 %1103  ;;  %v1165_v58 = vmul.f32 %v3302_v44, %v3955_v43  ;;  %v3962_v43 = vld [vmem:[#allocation28_spill] sm:$0xff] }
 0x3ce   :  { %1278 = vmatpush1.msra.mxu1 %v1175_v59  ;;  %v1111_v12 = vsel %vm193_vm3, %v1102_v61, %v1104_v10  ;;  %v1166_v59 = vmul.f32 %v3304_v28, %v3954_v26 }
 0x3cf   :  { %v1106_v22 = vpop.permute.xlu1 %1105  ;;  %v1169_v50 = vmul.f32 %v1111_v12, %v3951_v49  ;;  %v3956_v12 = vld [vmem:[#allocation20_spill] sm:$0xff] }
 0x3d0   :  { %v1110_v1 = vsel %vm193_vm3, %v1104_v10, %v1106_v22 }
 0x3d1   :  { %v1170_v40 = vmul.f32 %v1110_v1, %v3950_v31  ;;  %v1108_v0 = vpop.permute.xlu0 %1107  ;;  %v3957_v1 = vld [vmem:[#allocation23_spill] sm:$0xff] }
 0x3d2   :  { %v1109_v41 = vsel %vm193_vm3, %v1106_v22, %v1108_v0  ;;  %v1112_v60 = vsel %vm193_vm3, %v1108_v0, %v1102_v61  ;;  %v1168_v22 = vmul.f32 %v3312_v6, %v3956_v12  ;;  %v1167_v31 = vmul.f32 %v3308_v9, %v3957_v1  ;;  %v3963_v1 = vld [vmem:[#allocation29_spill] sm:$0xff] }
 0x3d3   :  { %v1171_v62 = vmul.f32 %v1109_v41, %v3952_v51  ;;  %v1172_v27 = vmul.f32 %v1112_v60, %v3953_v11  ;;  %v1090_v7 = vpop.permute.xlu1 %1089  ;;  %1208 = vmatprep.subr.mxu0 %v1170_v40  ;;  %v3958_v40 = vld [vmem:[#allocation24_spill] sm:$0xff]  ;;  %v3959_v41 = vld [vmem:[#allocation25_spill] sm:$0xff]  ;;  %v3960_v51 = vld [vmem:[#allocation27_spill] sm:$0xff] }
 0x3d4   :  { %1209 = vmatpush1.msra.mxu0 %v1169_v50  ;;  %v3961_v11 = vld [vmem:[#allocation26_spill] sm:$0xff] }
 0x3d5   :  { %1279 = vmatprep.subr.mxu1 %v1172_v27  ;;  %v1092_v10 = vpop.permute.xlu0 %1091  ;;  %1210 = vmatprep.subr.mxu0 %v1166_v59 }
 0x3d6   :  { %v1099_v61 = vsel %vm180_vm4, %v1090_v7, %v1092_v10  ;;  %1211 = vmatpush1.msra.mxu0 %v1165_v58  ;;  %1280 = vmatpush1.msra.mxu1 %v1171_v62 }
 0x3d7   :  { %v1162_v28 = vmul.f32 %v1099_v61, %v3958_v40  ;;  %v1094_v0 = vpop.permute.xlu1 %1093  ;;  %1281 = vmatprep.subr.mxu1 %v1168_v22  ;;  %v3964_v40 = vld [vmem:[#allocation31_spill] sm:$0xff] }
 0x3d8   :  { %1282 = vmatpush1.msra.mxu1 %v1167_v31  ;;  %v1098_v44 = vsel %vm180_vm4, %v1092_v10, %v1094_v0 }
 0x3d9   :  { %v1096_v49 = vpop.permute.xlu0 %1095  ;;  %1212 = vmatprep.subr.mxu0 %v1162_v28  ;;  %v1163_v27 = vmul.f32 %v1098_v44, %v3961_v11  ;;  %v3965_v44 = vld [vmem:[#allocation30_spill] sm:$0xff] }
 0x3da   :  { %v1097_v6 = vsel %vm180_vm4, %v1094_v0, %v1096_v49  ;;  %v1100_v50 = vsel %vm180_vm4, %v1096_v49, %v1090_v7 }
 0x3db   :  { %v1161_v60 = vmul.f32 %v1100_v50, %v3959_v41  ;;  %v1164_v9 = vmul.f32 %v1097_v6, %v3960_v51  ;;  %v1078_v62 = vpop.permute.xlu1 %1077  ;;  %v3966_v41 = vld [vmem:[#allocation32_spill] sm:$0xff] }
 0x3dd   :  { %1283 = vmatprep.subr.mxu1 %v1164_v9  ;;  %v1080_v26 = vpop.permute.xlu0 %1079  ;;  %1213 = vmatpush1.msra.mxu0 %v1161_v60 }
 0x3de   :  { %v1087_v59 = vsel %vm167_vm5, %v1078_v62, %v1080_v26  ;;  %1284 = vmatpush1.msra.mxu1 %v1163_v27 }
 0x3df   :  { %v1158_v58 = vmul.f32 %v1087_v59, %v3962_v43  ;;  %v1082_v10 = vpop.permute.xlu1 %1081  ;;  %v3968_v43 = vld [vmem:[#allocation35_spill] sm:$0xff] }
 0x3e0   :  { %v1086_v7 = vsel %vm167_vm5, %v1080_v26, %v1082_v10  ;;  %v3967_v26 = vld [vmem:[#allocation33_spill] sm:$0xff] }
 0x3e1   :  { %v1084_v12 = vpop.permute.xlu0 %1083  ;;  %1214 = vmatprep.subr.mxu0 %v1158_v58  ;;  %v1159_v49 = vmul.f32 %v1086_v7, %v3965_v44  ;;  %v3969_v7 = vld [vmem:[#allocation34_spill] sm:$0xff] }
 0x3e2   :  { %v1085_v22 = vsel %vm167_vm5, %v1082_v10, %v1084_v12  ;;  %v1088_v61 = vsel %vm167_vm5, %v1084_v12, %v1078_v62 }
 0x3e3   :  { %v1157_v31 = vmul.f32 %v1088_v61, %v3963_v1  ;;  %v1160_v28 = vmul.f32 %v1085_v22, %v3964_v40  ;;  %v1066_v0 = vpop.permute.xlu1 %1065  ;;  %v3970_v1 = vld [vmem:[#allocation36_spill] sm:$0xff] }
 0x3e5   :  { %1285 = vmatprep.subr.mxu1 %v1160_v28  ;;  %v1068_v6 = vpop.permute.xlu0 %1067  ;;  %1215 = vmatpush1.msra.mxu0 %v1157_v31 }
 0x3e6   :  { %v1075_v50 = vsel %vm154_vm6, %v1066_v0, %v1068_v6  ;;  %1286 = vmatpush1.msra.mxu1 %v1159_v49 }
 0x3e7   :  { %v1154_v60 = vmul.f32 %v1075_v50, %v3966_v41  ;;  %v1070_v51 = vpop.permute.xlu1 %1069  ;;  %v3972_v41 = vld [vmem:[#allocation39_spill] sm:$0xff] }
 0x3e8   :  { %v1074_v9 = vsel %vm154_vm6, %v1068_v6, %v1070_v51  ;;  %v3971_v6 = vld [vmem:[#allocation37_spill] sm:$0xff] }
 0x3e9   :  { %v1072_v62 = vpop.permute.xlu0 %1071  ;;  %1216 = vmatprep.subr.mxu0 %v1154_v60  ;;  %v1155_v12 = vmul.f32 %v1074_v9, %v3969_v7  ;;  %v3973_v9 = vld [vmem:[#allocation38_spill] sm:$0xff]  ;;  %v2291_v7 = vld [vmem:[%s3762_s4 + $0x70] sm:$0xff] }
 0x3ea   :  { %v1073_v11 = vsel %vm154_vm6, %v1070_v51, %v1072_v62  ;;  %v1076_v27 = vsel %vm154_vm6, %v1072_v62, %v1066_v0  ;;  %v1965_v51 = vld [vmem:[%s3759_s1 + $0x8] sm:$0xff] }
 0x3eb   :  { %v1153_v59 = vmul.f32 %v1076_v27, %v3967_v26  ;;  %v1156_v58 = vmul.f32 %v1073_v11, %v3968_v43  ;;  %v1054_v10 = vpop.permute.xlu1 %1053  ;;  %v3974_v11 = vld [vmem:[#allocation40_spill] sm:$0xff] }
 0x3ec   :  { %v2288_v43 = vld [vmem:[%s3762_s4 + $0x78] sm:$0xff] }
 0x3ed   :  { %1287 = vmatprep.subr.mxu1 %v1156_v58  ;;  %v1056_v22 = vpop.permute.xlu0 %1055  ;;  %1217 = vmatpush1.msra.mxu0 %v1153_v59  ;;  %v2289_v58 = vld [vmem:[%s3762_s4 + $0xf0] sm:$0xff] }
 0x3ee   :  { %v1063_v61 = vsel %vm141_vm7, %v1054_v10, %v1056_v22  ;;  %1288 = vmatpush1.msra.mxu1 %v1155_v12  ;;  %v2292_v12 = vld [vmem:[%s3762_s4 + $0x1f0] sm:$0xff] }
 0x3ef   :  { %v1150_v31 = vmul.f32 %v1063_v61, %v3970_v1  ;;  %v1058_v40 = vpop.permute.xlu1 %1057  ;;  %v2294_v61 = vld [vmem:[%s3762_s4 + $0x170] sm:$0xff]  ;;  %v2295_v1 = vld [vmem:[%s3762_s4 + $0x68] sm:$0xff] }
 0x3f0   :  { %v1062_v28 = vsel %vm141_vm7, %v1056_v22, %v1058_v40  ;;  %v2293_v22 = vld [vmem:[%s3762_s4 + $0xe8] sm:$0xff] }
 0x3f1   :  { %v1060_v0 = vpop.permute.xlu0 %1059  ;;  %1218 = vmatprep.subr.mxu0 %v1150_v31  ;;  %v1151_v62 = vmul.f32 %v1062_v28, %v3973_v9  ;;  %v2296_v31 = vld [vmem:[%s3762_s4 + $0x1e8] sm:$0xff]  ;;  %v2307_v9 = vld [vmem:[%s3762_s4 + $0x50] sm:$0xff] }
 0x3f2   :  { %v1061_v44 = vsel %vm141_vm7, %v1058_v40, %v1060_v0  ;;  %v1064_v49 = vsel %vm141_vm7, %v1060_v0, %v1054_v10  ;;  %v2290_v10 = vld [vmem:[%s3762_s4 + $0x178] sm:$0xff]  ;;  %v2297_v40 = vld [vmem:[%s3762_s4 + $0xe0] sm:$0xff]  ;;  %v2298_v28 = vld [vmem:[%s3762_s4 + $0x168] sm:$0xff] }
 0x3f3   :  { %v1149_v50 = vmul.f32 %v1064_v49, %v3971_v6  ;;  %v1152_v60 = vmul.f32 %v1061_v44, %v3972_v41  ;;  %v2299_v0 = vld [vmem:[%s3762_s4 + $0x60] sm:$0xff]  ;;  %v2301_v49 = vld [vmem:[%s3762_s4 + $0xd8] sm:$0xff] }
 0x3f4   :  { %v2300_v44 = vld [vmem:[%s3762_s4 + $0x1e0] sm:$0xff]  ;;  %v2304_v41 = vld [vmem:[%s3762_s4 + $0x1d8] sm:$0xff] }
 0x3f5   :  { %1219 = vmatpush1.msra.mxu0 %v1149_v50  ;;  %1289 = vmatprep.subr.mxu1 %v1152_v60  ;;  %v2302_v6 = vld [vmem:[%s3762_s4 + $0x160] sm:$0xff]  ;;  %v2303_v50 = vld [vmem:[%s3762_s4 + $0x58] sm:$0xff]  ;;  %v2305_v60 = vld [vmem:[%s3762_s4 + $0xd0] sm:$0xff] }
 0x3f6   :  { %1966 = vmatmul.mubr.msk.f32.vlgmr.msra.gmra.mxu0 %vm273_vm8, %v1965_v51  ;;  %1290 = vmatpush1.msra.mxu1 %v1151_v62  ;;  %v2308_v62 = vld [vmem:[%s3762_s4 + $0x1d0] sm:$0xff] }
 0x3f7   :  { %1967 = vmatmul.mubr.msk.f32.vlgmr.msra.gmra.mxu1 %vm273_vm8, %v1965_v51  ;;  %2120 = vmatprep.subr.mxu0 %v3974_v11  ;;  %v2306_v51 = vld [vmem:[%s3762_s4 + $0x158] sm:$0xff]  ;;  %v2309_v11 = vld [vmem:[%s3762_s4 + $0xc8] sm:$0xff] }
 0x3f8   :  { %2121 = vmatpush3.msra.mxu0 %v2787_v8  ;;  %2155 = vmatprep.subr.mxu1 %v3975_v14  ;;  %v3976_v8 = vld [vmem:[#allocation42_spill] sm:$0xff]  ;;  %v2310_v14 = vld [vmem:[%s3762_s4 + $0x150] sm:$0xff] }
 0x3f9   :  { %2122 = vmatprep.subr.mxu0 %v2798_v15  ;;  %2156 = vmatpush3.msra.mxu1 %v2803_v16  ;;  %v3987_v15 = vld [vmem:[#allocation53_spill] sm:$0xff]  ;;  %v3988_v16 = vld [vmem:[#allocation54_spill] sm:$0xff] }
 0x3fa   :  { %2123 = vmatpush3.msra.mxu0 %v2810_v17  ;;  %2157 = vmatprep.subr.mxu1 %v2815_v21  ;;  %v3989_v17 = vld [vmem:[#allocation55_spill] sm:$0xff]  ;;  %v3990_v21 = vld [vmem:[#allocation56_spill] sm:$0xff] }
 0x3fb   :  { %2124 = vmatprep.subr.mxu0 %v2822_v23  ;;  %2158 = vmatpush3.msra.mxu1 %v2827_v3  ;;  %v3991_v23 = vld [vmem:[#allocation57_spill] sm:$0xff]  ;;  %v3992_v3 = vld [vmem:[#allocation58_spill] sm:$0xff] }
 0x3fc   :  { %2125 = vmatpush3.msra.mxu0 %v2834_v24  ;;  %2159 = vmatprep.subr.mxu1 %v2839_v29  ;;  %v3993_v24 = vld [vmem:[#allocation59_spill] sm:$0xff]  ;;  %v3994_v29 = vld [vmem:[#allocation60_spill] sm:$0xff] }
 0x3fd   :  { %2126 = vmatprep.subr.mxu0 %v2846_v2  ;;  %2160 = vmatpush3.msra.mxu1 %v2851_v30  ;;  %v3995_v2 = vld [vmem:[#allocation61_spill] sm:$0xff]  ;;  %v3996_v30 = vld [vmem:[#allocation62_spill] sm:$0xff] }
 0x3fe   :  { %2127 = vmatpush3.msra.mxu0 %v2858_v32  ;;  %2161 = vmatprep.subr.mxu1 %v2863_v34  ;;  %v3997_v32 = vld [vmem:[#allocation63_spill] sm:$0xff]  ;;  %v3998_v34 = vld [vmem:[#allocation64_spill] sm:$0xff] }
 0x3ff   :  { %2128 = vmatprep.subr.mxu0 %v2870_v35  ;;  %2162 = vmatpush3.msra.mxu1 %v2875_v36  ;;  %v3999_v35 = vld [vmem:[#allocation65_spill] sm:$0xff]  ;;  %v4000_v36 = vld [vmem:[#allocation66_spill] sm:$0xff] }
 0x400   :  { %2129 = vmatpush3.msra.mxu0 %v2882_v37  ;;  %2163 = vmatprep.subr.mxu1 %v2887_v46  ;;  %v4001_v37 = vld [vmem:[#allocation67_spill] sm:$0xff]  ;;  %v4002_v46 = vld [vmem:[#allocation68_spill] sm:$0xff] }
 0x401   :  { %2130 = vmatprep.subr.mxu0 %v2894_v47  ;;  %2164 = vmatpush3.msra.mxu1 %v2899_v48  ;;  %v2286_v47 = vld [vmem:[%s3762_s4 + $0xf8] sm:$0xff] }
 0x402   :  { %2131 = vmatpush3.msra.mxu0 %v2906_v52  ;;  %2165 = vmatprep.subr.mxu1 %v2911_v53  ;;  %v2287_v48 = vld [vmem:[%s3762_s4 + $0x1f8] sm:$0xff]  ;;  %v2363_v52 = vmov 2   ;;  %v2364_v53 = vmov 3  }
 0x403   :  { %2132 = vmatprep.subr.mxu0 %v2918_v54  ;;  %2166 = vmatpush3.msra.mxu1 %v2923_v55  ;;  %v4003_v54 = vld [vmem:[#allocation69_spill] sm:$0xff] }
 0x404   :  { %2133 = vmatpush3.msra.mxu0 %v2930_v56  ;;  %2167 = vmatprep.subr.mxu1 %v2935_v63 }
 0x405   :  { %2134 = vmatprep.subr.mxu0 %v2942_v5  ;;  %2168 = vmatpush3.msra.mxu1 %v2947_v4  ;;  %v3977_v5 = vld [vmem:[#allocation43_spill] sm:$0xff]  ;;  %v3978_v4 = vld [vmem:[#allocation44_spill] sm:$0xff] }
 0x406   :  { %2135 = vmatpush3.msra.mxu0 %v2954_v39  ;;  %2169 = vmatprep.subr.mxu1 %v2959_v45  ;;  %v3979_v39 = vld [vmem:[#allocation45_spill] sm:$0xff]  ;;  %v3980_v45 = vld [vmem:[#allocation46_spill] sm:$0xff] }
 0x407   :  { %2136 = vmatprep.subr.mxu0 %v2966_v38  ;;  %2170 = vmatpush3.msra.mxu1 %v2971_v33  ;;  %v3981_v38 = vld [vmem:[#allocation47_spill] sm:$0xff]  ;;  %v3982_v33 = vld [vmem:[#allocation48_spill] sm:$0xff] }
 0x408   :  { %2137 = vmatpush3.msra.mxu0 %v2978_v19  ;;  %2171 = vmatprep.subr.mxu1 %v2983_v20  ;;  %v3983_v19 = vld [vmem:[#allocation49_spill] sm:$0xff]  ;;  %v3984_v20 = vld [vmem:[#allocation50_spill] sm:$0xff] }
 0x409   :  { %2138 = vmatprep.subr.mxu0 %v2990_v18  ;;  %2172 = vmatpush3.msra.mxu1 %v2995_v13  ;;  %v3985_v18 = vld [vmem:[#allocation51_spill] sm:$0xff]  ;;  %v3986_v13 = vld [vmem:[#allocation52_spill] sm:$0xff] }
 0x40a   :  { %2139 = vmatpush3.msra.mxu0 %v3976_v8  ;;  %2173 = vmatprep.subr.mxu1 %v3977_v5  ;;  %v2311_v8 = vld [vmem:[%s3762_s4 + $0x48] sm:$0xff] }
 0x40b   :  { %2140 = vmatprep.subr.mxu0 %v3978_v4  ;;  %2174 = vmatpush3.msra.mxu1 %v3979_v39  ;;  %v2312_v5 = vld [vmem:[%s3762_s4 + $0x1c8] sm:$0xff] }
 0x40c   :  { %2141 = vmatpush3.msra.mxu0 %v3980_v45  ;;  %2175 = vmatprep.subr.mxu1 %v3981_v38 }
 0x40d   :  { %2142 = vmatprep.subr.mxu0 %v3982_v33  ;;  %2176 = vmatpush3.msra.mxu1 %v3983_v19 }
 0x40e   :  { %2143 = vmatpush3.msra.mxu0 %v3984_v20  ;;  %2177 = vmatprep.subr.mxu1 %v3985_v18 }
 0x40f   :  { %2144 = vmatprep.subr.mxu0 %v3986_v13  ;;  %2178 = vmatpush3.msra.mxu1 %v3987_v15 }
 0x410   :  { %2145 = vmatpush3.msra.mxu0 %v3988_v16  ;;  %2179 = vmatprep.subr.mxu1 %v3989_v17 }
 0x411   :  { %2146 = vmatprep.subr.mxu0 %v3990_v21  ;;  %2180 = vmatpush3.msra.mxu1 %v3991_v23 }
 0x412   :  { %2147 = vmatpush3.msra.mxu0 %v3992_v3  ;;  %2181 = vmatprep.subr.mxu1 %v3993_v24 }
 0x413   :  { %2148 = vmatprep.subr.mxu0 %v3994_v29  ;;  %2182 = vmatpush3.msra.mxu1 %v3995_v2 }
 0x414   :  { %2149 = vmatpush3.msra.mxu0 %v3996_v30  ;;  %2183 = vmatprep.subr.mxu1 %v3997_v32 }
 0x415   :  { %2150 = vmatprep.subr.mxu0 %v3998_v34  ;;  %2184 = vmatpush3.msra.mxu1 %v3999_v35 }
 0x416   :  { %2151 = vmatpush3.msra.mxu0 %v4000_v36  ;;  %2185 = vmatprep.subr.mxu1 %v4001_v37 }
 0x417   :  { %2186 = vmatpush3.msra.mxu1 %v4002_v46  ;;  %2190 = vmatprep.subr.mxu0 %v2286_v47  ;;  %v2313_v47 = vld [vmem:[%s3762_s4 + $0xc0] sm:$0xff] }
 0x418   :  { %2225 = vmatprep.subr.mxu1 %v2287_v48  ;;  %2277 = vset.pattern.permute.xlu1 %v2363_v52  ;;  %v2314_v48 = vld [vmem:[%s3762_s4 + $0x148] sm:$0xff]  ;;  %v2315_v52 = vld [vmem:[%s3762_s4 + $0x40] sm:$0xff] }
 0x419   :  { %2278 = vset.pattern.permute.xlu0 %v2364_v53  ;;  %1621 = vperm.xlu1 %2277, %v4003_v54   ;;  %v2316_v53 = vld [vmem:[%s3762_s4 + $0x1c0] sm:$0xff] }
 0x41a   :  { %1627 = vperm.xlu0 %2278, %v4003_v54   ;;  %v2317_v54 = vld [vmem:[%s3762_s4 + $0xb8] sm:$0xff] }
 0x4b6   :  { %v3559_v55 = vpop.f32.mrf.mxu0 }
 0x4b7   :  { %v3561_v56 = vpop.f32.mrf.mxu1 }
 0x4b8   :  { %v3563_v63 = vpop.f32.mrf.mxu0 }
 0x4b9   :  { %v1472_v27 = vmul.f32 %v3563_v63, %v3563_v63  ;;  %v3567_v26 = vpop.f32.mrf.mxu1  ;;  %1394 = vmatprep.mubr.f32.mxu0 %v3563_v63 }
 0x4ba   :  { %v1474_v59 = vmul.f32 %v3567_v26, %v3567_v26  ;;  %1395 = vmatmul.mubr.f32.vlgmr.msra.gmra.mxu0 %v3559_v55  ;;  %1464 = vmatprep.mubr.f32.mxu1 %v3567_v26 }
 0x4bb   :  { %2191 = vmatpush3.msra.mxu0 %v2288_v43  ;;  %1465 = vmatmul.mubr.f32.vlgmr.msra.gmra.mxu1 %v3561_v56  ;;  %v2320_v43 = vld [vmem:[%s3762_s4 + $0x1b8] sm:$0xff] }
 0x4bc   :  { %2192 = vmatprep.subr.mxu0 %v2289_v58  ;;  %1539 = vmatprep.mubr.f32.mxu0 %v1472_v27  ;;  %v2318_v27 = vld [vmem:[%s3762_s4 + $0x140] sm:$0xff]  ;;  %v2321_v58 = vld [vmem:[%s3762_s4 + $0xb0] sm:$0xff] }
 0x4bd   :  { %2226 = vmatpush3.msra.mxu1 %v2290_v10  ;;  %2193 = vmatpush3.msra.mxu0 %v2291_v7  ;;  %v2322_v10 = vld [vmem:[%s3762_s4 + $0x138] sm:$0xff]  ;;  %v2323_v7 = vld [vmem:[%s3762_s4 + $0x30] sm:$0xff] }
 0x4be   :  { %2227 = vmatprep.subr.mxu1 %v2292_v12  ;;  %1609 = vmatprep.mubr.f32.mxu1 %v1474_v59  ;;  %v2319_v59 = vld [vmem:[%s3762_s4 + $0x38] sm:$0xff]  ;;  %v2324_v12 = vld [vmem:[%s3762_s4 + $0x1b0] sm:$0xff]  ;;  %s2365_s4 = smov [#allocation2]  }
 0x4bf   :  { %2194 = vmatprep.subr.mxu0 %v2293_v22  ;;  %2228 = vmatpush3.msra.mxu1 %v2294_v61  ;;  %v1628_v61 = vpop.permute.xlu0 %1627  ;;  %s1943_s5 = sshll.u32 %s2365_s4, 4  ;;  %s1944_s5 = int_to_ptr.vmem [resolvable:$true] %s1943_s5 }
 0x4c0   :  { %2195 = vmatpush3.msra.mxu0 %v2295_v1  ;;  %2229 = vmatprep.subr.mxu1 %v2296_v31  ;;  %s2329_s11 = scalar_lea.vmem %s1944_s5, 512  ;;  %p2334_p1 = scmp.lt.s32.totalorder %s1944_s5, %s1944_s5 }
 0x4c1   :  { %2196 = vmatprep.subr.mxu0 %v2297_v40  ;;  %2230 = vmatpush3.msra.mxu1 %v2298_v28  ;;  %p2330_p0 = scmp.ne.s32.totalorder %s1944_s5, %s2329_s11  ;;  %p2335_p2 = scmp.lt.s32.totalorder %s2329_s11, %s2329_s11 }
 0x4c2   :  { %2197 = vmatpush3.msra.mxu0 %v2299_v0  ;;  %2231 = vmatprep.subr.mxu1 %v2300_v44 }
 0x4c3   :  { %2198 = vmatprep.subr.mxu0 %v2301_v49  ;;  %2232 = vmatpush3.msra.mxu1 %v2302_v6  ;;  %p2336_p3 = por %p2335_p2, %p2334_p1 }
 0x4c4   :  { %2199 = vmatpush3.msra.mxu0 %v2303_v50  ;;  %2233 = vmatprep.subr.mxu1 %v2304_v41 }
 0x4c5   :  { %2200 = vmatprep.subr.mxu0 %v2305_v60  ;;  %2234 = vmatpush3.msra.mxu1 %v2306_v51  ;;  %p2337_p4 = pnand %p2336_p3, %p2330_p0 }
 0x4c6   :  { %2201 = vmatpush3.msra.mxu0 %v2307_v9  ;;  %2235 = vmatprep.subr.mxu1 %v2308_v62  ;;  %v2325_v62 = vld [vmem:[%s3758_s0] sm:$0xff] }
 0x4c7   :  { %2202 = vmatprep.subr.mxu0 %v2309_v11  ;;  %2236 = vmatpush3.msra.mxu1 %v2310_v14 }
 0x4c8   :  { %2203 = vmatpush3.msra.mxu0 %v2311_v8  ;;  %2237 = vmatprep.subr.mxu1 %v2312_v5  ;;  %v2328_v5 = vld [vmem:[%s3758_s0 + $0x18] sm:$0xff] }
 0x4c9   :  { %2204 = vmatprep.subr.mxu0 %v2313_v47  ;;  %2238 = vmatpush3.msra.mxu1 %v2314_v48 }
 0x4ca   :  { %2205 = vmatpush3.msra.mxu0 %v2315_v52  ;;  %2239 = vmatprep.subr.mxu1 %v2316_v53 }
 0x4cb   :  { %2206 = vmatprep.subr.mxu0 %v2317_v54  ;;  %2240 = vmatpush3.msra.mxu1 %v2318_v27 }
 0x4cc   :  { %2207 = vmatpush3.msra.mxu0 %v2319_v59  ;;  %2241 = vmatprep.subr.mxu1 %v2320_v43 }
 0x4cd   :  { %2208 = vmatprep.subr.mxu0 %v2321_v58  ;;  %2242 = vmatpush3.msra.mxu1 %v2322_v10 }
 0x4ce   :  { %2209 = vmatpush3.msra.mxu0 %v2323_v7  ;;  %2243 = vmatprep.subr.mxu1 %v2324_v12 }
 0x4cf   :  { %2210 = vmatprep.subr.mxu0 %v3978_v4  ;;  %2244 = vmatpush3.msra.mxu1 %v3979_v39  ;;  %v1471_v4 = vmul.f32 %v3559_v55, %v3559_v55  ;;  %v1473_v39 = vmul.f32 %v3561_v56, %v3561_v56 }
 0x4d0   :  { %2211 = vmatpush3.msra.mxu0 %v3980_v45  ;;  %2245 = vmatprep.subr.mxu1 %v3981_v38  ;;  %v4004_v45 = vld [vmem:[#allocation70_spill] sm:$0xff]  ;;  %v4005_v38 = vld [vmem:[#allocation71_spill] sm:$0xff] }
 0x4d1   :  { %2212 = vmatprep.subr.mxu0 %v3982_v33  ;;  %2246 = vmatpush3.msra.mxu1 %v3983_v19 }
 0x4d2   :  { %2213 = vmatpush3.msra.mxu0 %v3984_v20  ;;  %2247 = vmatprep.subr.mxu1 %v3985_v18 }
 0x4d3   :  { %2214 = vmatprep.subr.mxu0 %v3986_v13  ;;  %2248 = vmatpush3.msra.mxu1 %v3987_v15 }
 0x4d4   :  { %2215 = vmatpush3.msra.mxu0 %v3988_v16  ;;  %2249 = vmatprep.subr.mxu1 %v3989_v17 }
 0x4d5   :  { %2216 = vmatprep.subr.mxu0 %v3990_v21  ;;  %2250 = vmatpush3.msra.mxu1 %v3991_v23 }
 0x4d6   :  { %2217 = vmatpush3.msra.mxu0 %v3992_v3  ;;  %2251 = vmatprep.subr.mxu1 %v3993_v24 }
 0x4d7   :  { %2218 = vmatprep.subr.mxu0 %v3994_v29  ;;  %2252 = vmatpush3.msra.mxu1 %v3995_v2 }
 0x4d8   :  { %2219 = vmatpush3.msra.mxu0 %v3996_v30  ;;  %2253 = vmatprep.subr.mxu1 %v3997_v32 }
 0x4d9   :  { %2220 = vmatprep.subr.mxu0 %v3998_v34  ;;  %2254 = vmatpush3.msra.mxu1 %v3999_v35 }
 0x4da   :  { %2221 = vmatpush3.msra.mxu0 %v4000_v36  ;;  %2255 = vmatprep.subr.mxu1 %v4001_v37  ;;  %v1622_v37 = vpop.permute.xlu1 %1621 }
 0x4db   :  { %1540 = vmatmul.mubr.f32.vlgmr.msra.gmra.mxu0 %v1471_v4  ;;  %2256 = vmatpush3.msra.mxu1 %v4002_v46 }
 0x4dc   :  { %1610 = vmatmul.mubr.f32.vlgmr.msra.gmra.mxu1 %v1473_v39  ;;  %1968 = vmatprep.subr.msk.mxu0 %vm743_vm9, %v4004_v45 }
 0x4dd   :  { %1971 = vmatprep.subr.msk.mxu1 %vm743_vm9, %v4005_v38  ;;  %1969 = vmatpush1.msk.msra.mxu0 %vm743_vm9, %v3262_v57 }
 0x4de   :  { %1972 = vmatpush1.msk.msra.mxu1 %vm743_vm9, %v3268_v42  ;;  %1698 = vmatprep.mubr.f32.mxu0 %v3935_v25 }
 0x4df   :  { %1769 = vmatprep.mubr.f32.mxu1 %v3935_v25  ;;  %1974 = vmatprep.subr.msk.mxu0 %vm743_vm9, %v4004_v45 }
 0x4e0   :  { %1977 = vmatprep.subr.msk.mxu1 %vm743_vm9, %v4005_v38 }
 0x57a   :  { %v2152_v33 = vpop.f32.mrf.mxu0 }
 0x57b   :  { %v2187_v19 = vpop.f32.mrf.mxu1 }
 0x57c   :  { %v2153_v20 = vpop.f32.mrf.mxu0 }
 0x57d   :  { %v2188_v18 = vpop.f32.mrf.mxu1  ;;  %v2154_v13 = vadd.f32 %v2153_v20, %v2152_v33 }
 0x57e   :  { %v2189_v15 = vadd.f32 %v2188_v18, %v2187_v19 }
 0x580   :  { %v1467_v16 = vadd.f32 %v2189_v15, %v2154_v13 }
 0x582   :  { %v1470_v29 = vmul.f32 0.00390625, %v1467_v16 }
 0x584   :  { %v1616_v32 = vmul.f32 %v1470_v29, %v1470_v29 }
 0x59b   :  { %v2222_v17 = vpop.f32.mrf.mxu0 }
 0x59c   :  { %v2257_v21 = vpop.f32.mrf.mxu1 }
 0x59d   :  { %v2223_v23 = vpop.f32.mrf.mxu0 }
 0x59e   :  { %v2224_v3 = vadd.f32 %v2223_v23, %v2222_v17  ;;  %v2258_v24 = vpop.f32.mrf.mxu1 }
 0x59f   :  { %v2259_v2 = vadd.f32 %v2258_v24, %v2257_v21 }
 0x5a1   :  { %v1612_v30 = vadd.f32 %v2259_v2, %v2224_v3 }
 0x5a3   :  { %v1615_v34 = vmul.f32 0.00390625, %v1612_v30 }
 0x5a5   :  { %v1617_v35 = vsub.f32 %v1615_v34, %v1616_v32 }
 0x5a7   :  { %v1618_v36 = vadd.f32 1e-05, %v1617_v35 }
 0x5a9   :  { %2282 = vrsqrt.f32 %v1618_v36 }
 0x5b6   :  { %v2283_v46 = vpop.eup %2282 }
 0x5b7   :  { %v1624_v22 = vmul.f32 %v2283_v46, %v1622_v37 }
 0x5b9   :  { %1970 = vmatmul.mubr.msk.f32.vlgmr.msra.gmra.mxu0 %vm739_vm10, %v1624_v22  ;;  %1973 = vmatmul.mubr.msk.f32.vlgmr.msra.gmra.mxu1 %vm739_vm10, %v1624_v22  ;;  %v1625_v1 = vmul.f32 %v1624_v22, %v1470_v29 }
 0x5ba   :  { %1975 = vmatpush1.msk.msra.mxu0 %vm743_vm9, %v3262_v57  ;;  %1978 = vmatpush1.msk.msra.mxu1 %vm743_vm9, %v3268_v42 }
 0x5bb   :  { %v1630_v31 = vsub.f32 %v1628_v61, %v1625_v1  ;;  %1843 = vmatprep.mubr.f32.mxu0 %v3935_v25  ;;  %1914 = vmatprep.mubr.f32.mxu1 %v3935_v25 }
 0x5bd   :  { %1976 = vmatmul.mubr.msk.f32.vlgmr.msra.gmra.mxu0 %vm739_vm10, %v1630_v31  ;;  %1979 = vmatmul.mubr.msk.f32.vlgmr.msra.gmra.mxu1 %vm739_vm10, %v1630_v31 }
 0x679   :  { %v1700_v40 = vpop.f32.mrf.mxu0  ;;  %v1771_v28 = vpop.f32.mrf.mxu1 }
 0x67a   :  { %v1921_v49 = vmul.f32 %v1700_v40, %v3559_v55  ;;  %v1923_v57 = vmul.f32 %v1771_v28, %v3561_v56  ;;  %v2326_v55 = vld [vmem:[%s3758_s0 + $0x10] sm:$0xff] }
 0x67b   :  { %v1702_v0 = vpop.f32.mrf.mxu0  ;;  %v1773_v44 = vpop.f32.mrf.mxu1 }
 0x67c   :  { %v1922_v42 = vmul.f32 %v1702_v0, %v3563_v63  ;;  %v1924_v41 = vmul.f32 %v1773_v44, %v3567_v26  ;;  %v2327_v26 = vld [vmem:[%s3758_s0 + $0x8] sm:$0xff] }
 0x67d   :  { %v1845_v6 = vpop.f32.mrf.mxu0  ;;  %v1916_v50 = vpop.f32.mrf.mxu1 }
 0x67e   :  { %v1925_v60 = vadd.f32 %v1921_v49, %v1845_v6  ;;  %v1927_v25 = vadd.f32 %v1923_v57, %v1916_v50 }
 0x67f   :  { %v1847_v51 = vpop.f32.mrf.mxu0  ;;  %v1918_v9 = vpop.f32.mrf.mxu1 }
 0x680   :  { %v1929_v11 = vadd.f32 %v2325_v62, %v1925_v60  ;;  %v1931_v56 = vadd.f32 %v2326_v55, %v1927_v25  ;;  %v1926_v14 = vadd.f32 %v1922_v42, %v1847_v51  ;;  %v1928_v63 = vadd.f32 %v1924_v41, %v1918_v9 }
 0x682   :  { %1933 = vst [vmem:[#allocation2] sm:$0xff] %v1929_v11  ;;  %1935 = vst [vmem:[#allocation2 + $0x10] sm:$0xff] %v1931_v56  ;;  %v1930_v8 = vadd.f32 %v2327_v26, %v1926_v14  ;;  %v1932_v47 = vadd.f32 %v2328_v5, %v1928_v63 }
 0x684   :  { %1934 = vst [vmem:[#allocation2 + $0x8] sm:$0xff] %v1930_v8  ;;  %1936 = vst [vmem:[#allocation2 + $0x18] sm:$0xff] %v1932_v47 }
 0x685   :  { %2340 = shalt.err (!%p2337_p4)
}
 0x686   :  { %1946 = dma.vmem_to_hbm [thread:$0]  %s1944_s5, 512, %s3764_s6, [#allocation3]  }
 0x687   :  { %2349 = dma.done.wait [#allocation3], 512  }
 0x688   :  { %2350 = vsyncadd [#allocation3], 4294966784 }
 0x689   :  { %1950 = vsyncpa [#allocation3], 1 }

</bundles_post_ra>
